<compile_context>
chip_gen: v6e
topology: v6e:2x2x1
jax: 0.10.0
libtpu: 0.0.40
codegen_flags: <defaults>
</compile_context>

<pallas_src>
import functools

import jax
import jax.numpy as jnp
from jax import lax
from jax.experimental import pallas as pl
from jax.experimental.pallas import tpu as pltpu


# ----------------------------------------------------------------------------------
# Fused kernel.  Per grid step (bi, vi):
#   vi == 0:  q   = tanh(emb_b @ W_q + b_q)                       (bb*L, H), parked in z scratch
#             loop over T tiles (online softmax, flash style):
#               h_t   = tanh(x_b[:, t0:t0+tt] @ W_enc + b_enc)    (bb, tt, H)
#               s     = q . h_t  (+ length mask)                  (bb, L, tt)
#               m,l,acc updated with the standard rescaling
#             ctx = acc / l ;  z = tanh(ctx + q)  -> bf16 VMEM scratch (bb*L, H)
#   all vi:   out[:, vi-tile] = z @ W_out[:, vi-tile] + b_out[vi-tile]   (bb*L, tv) f32
# ----------------------------------------------------------------------------------
def fused_att_kernel(lengths_ref,                       # SMEM scalar-prefetch: (B,) int32
                     x_ref, emb_ref,
                     w_enc_ref, b_enc_ref, w_q_ref, b_q_ref,
                     w_out_ref, b_out_ref,
                     out_ref,
                     z_ref, m_ref, l_ref, acc_ref,
                     *, tt):
    bi = pl.program_id(0)
    vi = pl.program_id(1)

    bb, T, F = x_ref.shape
    _, L, H = emb_ref.shape
    n_t = T // tt                                       # static

    @pl.when(vi == 0)
    def _compute_attention_state():
        # --- query projection, batched over all bb*L target rows (fills MXU sublanes) ---
        emb2 = emb_ref[...].reshape(bb * L, H)          # bf16
        q = jnp.tanh(jnp.dot(emb2, w_q_ref[...],
                             preferred_element_type=jnp.float32) + b_q_ref[...])
        # Park q (bf16) in the z scratch: re-read per T tile instead of holding it in vregs.
        z_ref[...] = q.astype(jnp.bfloat16)

        # --- per-batch-element valid frame counts from SMEM (replaces the mask input) ---
        base = bi * bb
        bidx = lax.broadcasted_iota(jnp.int32, (bb, 1, 1), 0)
        len_col = jnp.zeros((bb, 1, 1), jnp.int32)
        for b in range(bb):                             # bb is static, tiny select chain
            len_col = jnp.where(bidx == b, lengths_ref[base + b], len_col)

        # --- online-softmax state (VMEM scratch keeps vreg pressure flat) ---
        m_ref[...] = jnp.full(m_ref.shape, -1e30, dtype=jnp.float32)
        l_ref[...] = jnp.zeros(l_ref.shape, dtype=jnp.float32)
        acc_ref[...] = jnp.zeros(acc_ref.shape, dtype=jnp.float32)

        @pl.loop(0, n_t)
        def _t_tile(ti):
            t0 = pl.multiple_of(ti * tt, tt)

            # Encoder projection for this T tile only (bounds live intermediates).
            x_t = x_ref[:, pl.ds(t0, tt), :].reshape(bb * tt, F)          # bf16
            h = jnp.tanh(jnp.dot(x_t, w_enc_ref[...],
                                 preferred_element_type=jnp.float32) + b_enc_ref[...])
            h_bf = h.reshape(bb, tt, H).astype(jnp.bfloat16)

            q_bf = z_ref[...].reshape(bb, L, H)                           # bf16 (parked q)

            # Scores: contract last dims of both operands — same formulation as the
            # reference flash-attention kernel (einsum 'bqd,bkd->bqk').
            s = lax.dot_general(
                q_bf, h_bf,
                dimension_numbers=(((2,), (2,)), ((0,), (0,))),
                preferred_element_type=jnp.float32)                       # (bb, L, tt)

            frame = t0 + lax.broadcasted_iota(jnp.int32, (bb, 1, tt), 2)
            valid = frame < len_col                                       # (bb, 1, tt)

            s_msk = jnp.where(valid, s, jnp.float32(-1e30))
            m_old = m_ref[...]
            m_new = jnp.maximum(m_old, jnp.max(s_msk, axis=-1, keepdims=True))
            a = jnp.exp(m_old - m_new)
            p = jnp.where(valid, jnp.exp(s - m_new), jnp.float32(0.0))    # (bb, L, tt)

            l_ref[...] = a * l_ref[...] + jnp.sum(p, axis=-1, keepdims=True)
            acc_ref[...] = a * acc_ref[...] + lax.dot_general(
                p.astype(jnp.bfloat16), h_bf,
                dimension_numbers=(((2,), (1,)), ((0,), (0,))),
                preferred_element_type=jnp.float32)                       # (bb, L, H)
            m_ref[...] = m_new

        # --- finalize: ctx = acc / l ; z = tanh(ctx + q) -> resident bf16 scratch ---
        ctx = acc_ref[...] * pl.reciprocal(l_ref[...], approx=True)       # EUP, off VALU path
        q_f = z_ref[...].reshape(bb, L, H).astype(jnp.float32)
        z = jnp.tanh(ctx + q_f)
        z_ref[...] = z.reshape(bb * L, H).astype(jnp.bfloat16)

    # --- vocab-tiled output projection: every vocab tile re-uses the resident z ---
    logits = jnp.dot(z_ref[...], w_out_ref[...],
                     preferred_element_type=jnp.float32) + b_out_ref[...]
    out_ref[...] = logits                               # (bb*L, tv), lane-dense f32 store


def _fused_att_decode(lengths, x_bf, emb_bf, w_enc, b_enc, w_q, b_q, w_out, b_out,
                      *, bb, tv, tt):
    B, T, F = x_bf.shape
    L = emb_bf.shape[1]
    H = w_enc.shape[1]
    V = w_out.shape[1]
    grid = (B // bb, V // tv)

    kernel = functools.partial(fused_att_kernel, tt=tt)

    # VMEM budget: double-buffered input/output blocks + scratch + bounded intermediates.
    in_bytes = 2 * (bb * T * F * 2              # x (bf16)
                    + bb * L * H * 2            # emb (bf16)
                    + F * H * 2 + H * 4         # W_enc, b_enc
                    + H * H * 2 + H * 4         # W_q, b_q
                    + H * tv * 2 + tv * 4)      # W_out tile, b_out tile
    out_bytes = 2 * (bb * L * tv * 4)
    scratch_bytes = bb * L * H * 2 + bb * L * H * 4 + 2 * bb * L * 4
    live_bytes = (bb * tt * H * 6               # h (f32 + bf16)
                  + bb * L * tt * 12            # s, masked s, p
                  + bb * L * H * 6)             # q / ctx / z temporaries
    needed = in_bytes + out_bytes + scratch_bytes + live_bytes

    try:  # ~48 MiB scoped cap on v7x (64 MiB physical), ~96 MiB on v5e/v6e (128 MiB).
        phys = int(getattr(pltpu.get_tpu_info(), "vmem_capacity_bytes", 64 << 20))
    except Exception:
        phys = 64 << 20
    cap = (phys * 3) // 4
    vmem_limit = int(min(2 * needed + (16 << 20), cap))

    return pl.pallas_call(
        kernel,
        out_shape=jax.ShapeDtypeStruct((B * L, V), jnp.float32),
        grid_spec=pltpu.PrefetchScalarGridSpec(
            num_scalar_prefetch=1,                      # lengths -> SMEM
            grid=grid,
            in_specs=[
                pl.BlockSpec((bb, T, F), lambda bi, vi, lens: (bi, 0, 0)),   # acoustic features
                pl.BlockSpec((bb, L, H), lambda bi, vi, lens: (bi, 0, 0)),   # target embeddings
                pl.BlockSpec((F, H), lambda bi, vi, lens: (0, 0)),           # W_enc
                pl.BlockSpec((1, H), lambda bi, vi, lens: (0, 0)),           # b_enc
                pl.BlockSpec((H, H), lambda bi, vi, lens: (0, 0)),           # W_q
                pl.BlockSpec((1, H), lambda bi, vi, lens: (0, 0)),           # b_q
                pl.BlockSpec((H, tv), lambda bi, vi, lens: (0, vi)),         # W_out vocab tile
                pl.BlockSpec((1, tv), lambda bi, vi, lens: (0, vi)),         # b_out vocab tile
            ],
            out_specs=pl.BlockSpec((bb * L, tv), lambda bi, vi, lens: (bi, vi)),
            scratch_shapes=[
                pltpu.VMEM((bb * L, H), jnp.bfloat16),   # resident z (also parks q)
                pltpu.VMEM((bb, L, 1), jnp.float32),     # running max  m
                pltpu.VMEM((bb, L, 1), jnp.float32),     # running sum  l
                pltpu.VMEM((bb, L, H), jnp.float32),     # ctx accumulator
            ],
        ),
        compiler_params=pltpu.CompilerParams(
            dimension_semantics=("parallel", "arbitrary"),
            vmem_limit_bytes=vmem_limit,
        ),
    )(lengths, x_bf, emb_bf, w_enc, b_enc, w_q, b_q, w_out, b_out)


# ----------------------------------------------------------------------------------
# Full AttModel forward (hp.ASR == True path): returns youtput (B, L, V)
# ----------------------------------------------------------------------------------
def att_model_forward(params, x, lengths, targets, gtemotion=None, x_new=None,
                      *, bb=None, tv=None, tt=128):
    # gtemotion / x_new are unused on the ASR path (matching the reference module).
    B, T, F = x.shape
    L = targets.shape[1]
    H = params["w_enc"].shape[1]
    V = params["w_out"].shape[1]

    if bb is None:
        # Keep >= 2 batch blocks when B > 1 (so both v7x TensorCores get work) while
        # pushing bb*L toward >= 256 rows (arithmetic intensity of the z @ W_out matmul).
        limit = B if B == 1 else B // 2
        bb = 1
        for cand in range(1, limit + 1):
            if B % cand == 0:
                bb = cand
                if cand * L >= 256:
                    break
    if tv is None:
        tv = V
        for cand in (1024, 896, 768, 640, 512, 384, 256, 128):
            if V % cand == 0:
                tv = cand
                break

    # Shape contract (real ASR shapes must be padded to these multiples before calling).
    assert B % bb == 0 and V % tv == 0 and T % tt == 0
    assert F % 128 == 0 and H % 128 == 0 and tv % 128 == 0 and tt % 128 == 0
    assert L % 8 == 0
    assert lengths.shape == (B,)

    # MXU inputs in bf16 (f32 accumulation happens inside the kernel).
    x_bf = x.astype(jnp.bfloat16)
    w_enc = params["w_enc"].astype(jnp.bfloat16)
    w_q = params["w_q"].astype(jnp.bfloat16)
    w_out = params["w_out"].astype(jnp.bfloat16)

    # Target embedding lookup (glue, plain JAX gather), streamed to the kernel in bf16.
    emb_bf = jnp.take(params["embed"], targets, axis=0).astype(jnp.bfloat16)   # (B, L, H)

    out = _fused_att_decode(
        lengths.astype(jnp.int32), x_bf, emb_bf,
        w_enc, params["b_enc"], w_q, params["b_q"], w_out, params["b_out"],
        bb=bb, tv=tv, tt=tt)
    return out.reshape(B, L, V)                        # layout plumbing in the wrapper


# ----------------------------------------------------------------------------------
# Pure-JAX f32 reference of the fused math (full softmax, no tiling) for tolerance checks.
# It consumes the same bf16-quantized inputs the kernel sees.
# ----------------------------------------------------------------------------------
def att_model_ref(params, x, lengths, targets):
    xf = x.astype(jnp.bfloat16).astype(jnp.float32)
    w_enc = params["w_enc"].astype(jnp.bfloat16).astype(jnp.float32)
    w_q = params["w_q"].astype(jnp.bfloat16).astype(jnp.float32)
    w_out = params["w_out"].astype(jnp.bfloat16).astype(jnp.float32)
    emb = jnp.take(params["embed"], targets, axis=0).astype(jnp.bfloat16).astype(jnp.float32)

    h = jnp.tanh(jnp.einsum("btf,fh->bth", xf, w_enc) + params["b_enc"])
    q = jnp.tanh(jnp.einsum("blh,hk->blk", emb, w_q) + params["b_q"])
    s = jnp.einsum("blh,bth->blt", q, h)
    mask = jnp.arange(x.shape[1])[None, None, :] < lengths[:, None, None]
    s = jnp.where(mask, s, -1e30)
    a = jax.nn.softmax(s, axis=-1)
    ctx = jnp.einsum("blt,bth->blh", a, h)
    z = jnp.tanh(ctx + q)
    return jnp.einsum("blh,hv->blv", z, w_out) + params["b_out"]


def init_params(key, feat_dim, hidden, vocab):
    ks = jax.random.split(key, 4)
    s = 0.1
    return {
        "w_enc": s * jax.random.normal(ks[0], (feat_dim, hidden), jnp.float32),
        "b_enc": jnp.zeros((1, hidden), jnp.float32),
        "embed": s * jax.random.normal(ks[1], (vocab, hidden), jnp.float32),
        "w_q":   s * jax.random.normal(ks[2], (hidden, hidden), jnp.float32),
        "b_q":   jnp.zeros((1, hidden), jnp.float32),
        "w_out": s * jax.random.normal(ks[3], (hidden, vocab), jnp.float32),
        "b_out": jnp.zeros((1, vocab), jnp.float32),
    }


if __name__ == "__main__":
    # Small lane-dense demo shapes: 2 batch blocks (parallel axis), 2 vocab tiles,
    # 2 T tiles (exercises the online-softmax loop and the length mask).
    B, T, F, H, L, V = 2, 256, 128, 128, 16, 2048

    key = jax.random.PRNGKey(0)
    k_x, k_t, k_p = jax.random.split(key, 3)

    x = jax.random.normal(k_x, (B, T, F), jnp.float32)              # acoustic features
    lengths = jnp.array([T, 160], dtype=jnp.int32)                  # valid frame counts
    targets = jax.random.randint(k_t, (B, L), 0, V, dtype=jnp.int32)  # token ids
    gtemotion = jnp.zeros((B,), jnp.int32)                          # unused (ASR path)
    x_new = x                                                       # unused (ASR path)

    params = init_params(k_p, F, H, V)

    youtput = att_model_forward(params, x, lengths, targets, gtemotion, x_new)
    youtput = jax.block_until_ready(youtput)

    assert youtput.shape == (B, L, V)
    assert bool(jnp.all(jnp.isfinite(youtput)))

    y_ref = att_model_ref(params, x, lengths, targets)
    assert bool(jnp.allclose(youtput, y_ref, atol=7e-2, rtol=7e-2)), (
        "max |diff| = %f" % float(jnp.max(jnp.abs(youtput - y_ref))))

    print("KERNEL_OK")
</pallas_src>

<mosaic_0001>
module attributes {stable_mosaic.version = 11 : i64} {
  func.func @fused_att_kernel(%arg0: i32, %arg1: i32, %arg2: memref<2xi32, #tpu.memory_space<smem>>, %arg3: memref<1x256x128xbf16, #tpu.memory_space<vmem>>, %arg4: memref<1x16x128xbf16, #tpu.memory_space<vmem>>, %arg5: memref<128x128xbf16, #tpu.memory_space<vmem>>, %arg6: memref<1x128xf32, #tpu.memory_space<vmem>>, %arg7: memref<128x128xbf16, #tpu.memory_space<vmem>>, %arg8: memref<1x128xf32, #tpu.memory_space<vmem>>, %arg9: memref<128x1024xbf16, #tpu.memory_space<vmem>>, %arg10: memref<1x1024xf32, #tpu.memory_space<vmem>>, %arg11: memref<16x1024xf32, #tpu.memory_space<vmem>>, %arg12: memref<16x128xbf16, #tpu.memory_space<vmem>>, %arg13: memref<1x16x1xf32, #tpu.memory_space<vmem>>, %arg14: memref<1x16x1xf32, #tpu.memory_space<vmem>>, %arg15: memref<1x16x128xf32, #tpu.memory_space<vmem>>) attributes {dimension_semantics = [#tpu.dimension_semantics<parallel>, #tpu.dimension_semantics<arbitrary>], iteration_bounds = array<i64: 2, 2>, scalar_prefetch = 1 : i64, scratch_operands = 4 : i64, tpu.core_type = #tpu.core_type<tc>, window_params = [{transform_indices = @transform_0, window_bounds = array<i64: 1, 256, 128>}, {transform_indices = @transform_1, window_bounds = array<i64: 1, 16, 128>}, {pipeline_mode = #tpu.pipeline_mode<synchronous>, transform_indices = @transform_2, window_bounds = array<i64: 128, 128>}, {pipeline_mode = #tpu.pipeline_mode<synchronous>, transform_indices = @transform_3, window_bounds = array<i64: 1, 128>}, {pipeline_mode = #tpu.pipeline_mode<synchronous>, transform_indices = @transform_4, window_bounds = array<i64: 128, 128>}, {pipeline_mode = #tpu.pipeline_mode<synchronous>, transform_indices = @transform_5, window_bounds = array<i64: 1, 128>}, {transform_indices = @transform_6, window_bounds = array<i64: 128, 1024>}, {transform_indices = @transform_7, window_bounds = array<i64: 1, 1024>}, {transform_indices = @transform_8, window_bounds = array<i64: 16, 1024>}]} {
    %c0_i32 = arith.constant 0 : i32
    %0 = arith.cmpi eq, %arg1, %c0_i32 : i32
    %1 = arith.extui %0 : i1 to i32
    %c0_i32_0 = arith.constant 0 : i32
    %2 = arith.cmpi ne, %1, %c0_i32_0 : i32
    scf.if %2 {
      %c0_8 = arith.constant 0 : index
      %c0_9 = arith.constant 0 : index
      %c0_10 = arith.constant 0 : index
      %10 = vector.load %arg4[%c0_8, %c0_9, %c0_10] : memref<1x16x128xbf16, #tpu.memory_space<vmem>>, vector<1x16x128xbf16>
      %11 = vector.shape_cast %10 : vector<1x16x128xbf16> to vector<16x128xbf16>
      %c0_11 = arith.constant 0 : index
      %c0_12 = arith.constant 0 : index
      %12 = vector.load %arg7[%c0_11, %c0_12] : memref<128x128xbf16, #tpu.memory_space<vmem>>, vector<128x128xbf16>
      %cst_13 = arith.constant dense<0.000000e+00> : vector<16x128xf32>
      %13 = tpu.matmul %11, %12, %cst_13 {dimension_numbers = #tpu.dot_dimension_numbers<[1], [0], [0], [1], [0, 0, 1, 1], [], []>} : vector<16x128xbf16>, vector<128x128xbf16>, vector<16x128xf32> -> vector<16x128xf32>
      %c0_14 = arith.constant 0 : index
      %c0_15 = arith.constant 0 : index
      %14 = vector.load %arg8[%c0_14, %c0_15] : memref<1x128xf32, #tpu.memory_space<vmem>>, vector<1x128xf32>
      %15 = vector.broadcast %14 : vector<1x128xf32> to vector<16x128xf32>
      %16 = arith.addf %13, %15 : vector<16x128xf32>
      %17 = math.tanh %16 : vector<16x128xf32>
      %18 = arith.truncf %17 : vector<16x128xf32> to vector<16x128xbf16>
      %c0_16 = arith.constant 0 : index
      %c0_17 = arith.constant 0 : index
      %19 = vector.load %arg12[%c0_16, %c0_17] : memref<16x128xbf16, #tpu.memory_space<vmem>>, vector<16x128xbf16>
      tpu.vector_store %arg12[%c0_16, %c0_17], %18 {strides = array<i32>} : memref<16x128xbf16, #tpu.memory_space<vmem>>, vector<16x128xbf16>,
      %c1_i32 = arith.constant 1 : i32
      %20 = arith.muli %arg0, %c1_i32 : i32
      %21 = tpu.iota {dimensions = array<i32: 0>} : vector<1x1x1xi32>
      %c0_i32_18 = arith.constant 0 : i32
      %22 = vector.broadcast %c0_i32_18 : i32 to vector<1x1x1xi32>
      %c0_i32_19 = arith.constant 0 : i32
      %23 = vector.broadcast %c0_i32_19 : i32 to vector<1x1x1xi32>
      %24 = arith.cmpi eq, %21, %23 : vector<1x1x1xi32>
      %c0_i32_20 = arith.constant 0 : i32
      %25 = arith.addi %20, %c0_i32_20 : i32
      %26 = arith.index_cast %25 : i32 to index
      %27 = memref.load %arg2[%26] : memref<2xi32, #tpu.memory_space<smem>>
      %28 = vector.broadcast %27 : i32 to vector<1x1x1xi32>
      %29 = arith.select %24, %28, %22 : vector<1x1x1xi1>, vector<1x1x1xi32>
      %cst_21 = arith.constant -1.000000e+30 : f32
      %30 = vector.broadcast %cst_21 : f32 to vector<1x16x1xf32>
      %c0_22 = arith.constant 0 : index
      %c0_23 = arith.constant 0 : index
      %c0_24 = arith.constant 0 : index
      %31 = vector.load %arg13[%c0_22, %c0_23, %c0_24] : memref<1x16x1xf32, #tpu.memory_space<vmem>>, vector<1x16x1xf32>
      tpu.vector_store %arg13[%c0_22, %c0_23, %c0_24], %30 {strides = array<i32>} : memref<1x16x1xf32, #tpu.memory_space<vmem>>, vector<1x16x1xf32>,
      %cst_25 = arith.constant 0.000000e+00 : f32
      %32 = vector.broadcast %cst_25 : f32 to vector<1x16x1xf32>
      %c0_26 = arith.constant 0 : index
      %c0_27 = arith.constant 0 : index
      %c0_28 = arith.constant 0 : index
      %33 = vector.load %arg14[%c0_26, %c0_27, %c0_28] : memref<1x16x1xf32, #tpu.memory_space<vmem>>, vector<1x16x1xf32>
      tpu.vector_store %arg14[%c0_26, %c0_27, %c0_28], %32 {strides = array<i32>} : memref<1x16x1xf32, #tpu.memory_space<vmem>>, vector<1x16x1xf32>,
      %cst_29 = arith.constant 0.000000e+00 : f32
      %34 = vector.broadcast %cst_29 : f32 to vector<1x16x128xf32>
      %c0_30 = arith.constant 0 : index
      %c0_31 = arith.constant 0 : index
      %c0_32 = arith.constant 0 : index
      %35 = vector.load %arg15[%c0_30, %c0_31, %c0_32] : memref<1x16x128xf32, #tpu.memory_space<vmem>>, vector<1x16x128xf32>
      tpu.vector_store %arg15[%c0_30, %c0_31, %c0_32], %34 {strides = array<i32>} : memref<1x16x128xf32, #tpu.memory_space<vmem>>, vector<1x16x128xf32>,
      %c0_i32_33 = arith.constant 0 : i32
      %c2_i32 = arith.constant 2 : i32
      %36 = arith.addi %c0_i32_33, %c2_i32 : i32
      %c1_i32_34 = arith.constant 1 : i32
      scf.for %arg16 = %c0_i32_33 to %36 step %c1_i32_34  : i32 {
        %c1_i32_46 = arith.constant 1 : i32
        %50 = arith.muli %arg16, %c1_i32_46 : i32
        %c0_i32_47 = arith.constant 0 : i32
        %51 = arith.addi %c0_i32_47, %50 : i32
        %c128_i32 = arith.constant 128 : i32
        %52 = arith.muli %51, %c128_i32 : i32
        %53 = tpu.assume_multiple %52, 128 : i32
        %c0_48 = arith.constant 0 : index
        %54 = arith.index_cast %53 : i32 to index
        %c0_49 = arith.constant 0 : index
        %55 = vector.load %arg3[%c0_48, %54, %c0_49] : memref<1x256x128xbf16, #tpu.memory_space<vmem>>, vector<1x128x128xbf16>
        %56 = vector.shape_cast %55 : vector<1x128x128xbf16> to vector<128x128xbf16>
        %c0_50 = arith.constant 0 : index
        %c0_51 = arith.constant 0 : index
        %57 = vector.load %arg5[%c0_50, %c0_51] : memref<128x128xbf16, #tpu.memory_space<vmem>>, vector<128x128xbf16>
        %cst_52 = arith.constant dense<0.000000e+00> : vector<128x128xf32>
        %58 = tpu.matmul %56, %57, %cst_52 {dimension_numbers = #tpu.dot_dimension_numbers<[1], [0], [0], [1], [0, 0, 1, 1], [], []>} : vector<128x128xbf16>, vector<128x128xbf16>, vector<128x128xf32> -> vector<128x128xf32>
        %c0_53 = arith.constant 0 : index
        %c0_54 = arith.constant 0 : index
        %59 = vector.load %arg6[%c0_53, %c0_54] : memref<1x128xf32, #tpu.memory_space<vmem>>, vector<1x128xf32>
        %60 = vector.broadcast %59 : vector<1x128xf32> to vector<128x128xf32>
        %61 = arith.addf %58, %60 : vector<128x128xf32>
        %62 = math.tanh %61 : vector<128x128xf32>
        %63 = vector.shape_cast %62 : vector<128x128xf32> to vector<1x128x128xf32>
        %64 = arith.truncf %63 : vector<1x128x128xf32> to vector<1x128x128xbf16>
        %c0_55 = arith.constant 0 : index
        %c0_56 = arith.constant 0 : index
        %65 = vector.load %arg12[%c0_55, %c0_56] : memref<16x128xbf16, #tpu.memory_space<vmem>>, vector<16x128xbf16>
        %66 = vector.shape_cast %65 : vector<16x128xbf16> to vector<1x16x128xbf16>
        %cst_57 = arith.constant dense<0.000000e+00> : vector<1x16x128xf32>
        %67 = tpu.matmul %66, %64, %cst_57 {dimension_numbers = #tpu.dot_dimension_numbers<[2], [2], [1], [1], [0, 0, 0, 1, 1, 1], [0], [0]>} : vector<1x16x128xbf16>, vector<1x128x128xbf16>, vector<1x16x128xf32> -> vector<1x16x128xf32>
        %68 = tpu.iota {dimensions = array<i32: 2>} : vector<1x1x128xi32>
        %69 = vector.broadcast %53 : i32 to vector<1x1x128xi32>
        %70 = arith.addi %69, %68 : vector<1x1x128xi32>
        %71 = vector.broadcast %29 : vector<1x1x1xi32> to vector<1x1x128xi32>
        %72 = arith.cmpi slt, %70, %71 : vector<1x1x128xi32>
        %cst_58 = arith.constant -1.000000e+30 : f32
        %73 = vector.shape_cast %72 : vector<1x1x128xi1> to vector<1x1x128xi1>
        %74 = vector.broadcast %73 : vector<1x1x128xi1> to vector<1x16x128xi1>
        %75 = vector.broadcast %cst_58 : f32 to vector<1x16x128xf32>
        %76 = arith.select %74, %67, %75 : vector<1x16x128xi1>, vector<1x16x128xf32>
        %c0_59 = arith.constant 0 : index
        %c0_60 = arith.constant 0 : index
        %c0_61 = arith.constant 0 : index
        %77 = vector.load %arg13[%c0_59, %c0_60, %c0_61] : memref<1x16x1xf32, #tpu.memory_space<vmem>>, vector<1x16x1xf32>
        %cst_62 = arith.constant dense<0xFF800000> : vector<1x16xf32>
        %78 = vector.multi_reduction <maximumf>, %76, %cst_62 [2] : vector<1x16x128xf32> to vector<1x16xf32>
        %79 = vector.shape_cast %78 : vector<1x16xf32> to vector<1x16x1xf32>
        %80 = arith.maximumf %77, %79 : vector<1x16x1xf32>
        %81 = arith.subf %77, %80 : vector<1x16x1xf32>
        %82 = math.exp %81 : vector<1x16x1xf32>
        %83 = vector.broadcast %80 : vector<1x16x1xf32> to vector<1x16x128xf32>
        %84 = arith.subf %67, %83 : vector<1x16x128xf32>
        %85 = math.exp %84 : vector<1x16x128xf32>
        %cst_63 = arith.constant 0.000000e+00 : f32
        %86 = vector.shape_cast %72 : vector<1x1x128xi1> to vector<1x1x128xi1>
        %87 = vector.broadcast %86 : vector<1x1x128xi1> to vector<1x16x128xi1>
        %88 = vector.broadcast %cst_63 : f32 to vector<1x16x128xf32>
        %89 = arith.select %87, %85, %88 : vector<1x16x128xi1>, vector<1x16x128xf32>
        %c0_64 = arith.constant 0 : index
        %c0_65 = arith.constant 0 : index
        %c0_66 = arith.constant 0 : index
        %90 = vector.load %arg14[%c0_64, %c0_65, %c0_66] : memref<1x16x1xf32, #tpu.memory_space<vmem>>, vector<1x16x1xf32>
        %91 = arith.mulf %82, %90 : vector<1x16x1xf32>
        %cst_67 = arith.constant dense<0.000000e+00> : vector<1x16xf32>
        %92 = vector.multi_reduction <add>, %89, %cst_67 [2] : vector<1x16x128xf32> to vector<1x16xf32>
        %93 = vector.shape_cast %92 : vector<1x16xf32> to vector<1x16x1xf32>
        %94 = arith.addf %91, %93 : vector<1x16x1xf32>
        %c0_68 = arith.constant 0 : index
        %c0_69 = arith.constant 0 : index
        %c0_70 = arith.constant 0 : index
        %95 = vector.load %arg14[%c0_68, %c0_69, %c0_70] : memref<1x16x1xf32, #tpu.memory_space<vmem>>, vector<1x16x1xf32>
        tpu.vector_store %arg14[%c0_68, %c0_69, %c0_70], %94 {strides = array<i32>} : memref<1x16x1xf32, #tpu.memory_space<vmem>>, vector<1x16x1xf32>,
        %c0_71 = arith.constant 0 : index
        %c0_72 = arith.constant 0 : index
        %c0_73 = arith.constant 0 : index
        %96 = vector.load %arg15[%c0_71, %c0_72, %c0_73] : memref<1x16x128xf32, #tpu.memory_space<vmem>>, vector<1x16x128xf32>
        %97 = vector.broadcast %82 : vector<1x16x1xf32> to vector<1x16x128xf32>
        %98 = arith.mulf %97, %96 : vector<1x16x128xf32>
        %99 = arith.truncf %89 : vector<1x16x128xf32> to vector<1x16x128xbf16>
        %cst_74 = arith.constant dense<0.000000e+00> : vector<1x16x128xf32>
        %100 = tpu.matmul %99, %64, %cst_74 {dimension_numbers = #tpu.dot_dimension_numbers<[2], [1], [1], [2], [0, 0, 0, 1, 1, 2], [0], [0]>} : vector<1x16x128xbf16>, vector<1x128x128xbf16>, vector<1x16x128xf32> -> vector<1x16x128xf32>
        %101 = arith.addf %98, %100 : vector<1x16x128xf32>
        %c0_75 = arith.constant 0 : index
        %c0_76 = arith.constant 0 : index
        %c0_77 = arith.constant 0 : index
        %102 = vector.load %arg15[%c0_75, %c0_76, %c0_77] : memref<1x16x128xf32, #tpu.memory_space<vmem>>, vector<1x16x128xf32>
        tpu.vector_store %arg15[%c0_75, %c0_76, %c0_77], %101 {strides = array<i32>} : memref<1x16x128xf32, #tpu.memory_space<vmem>>, vector<1x16x128xf32>,
        %c0_78 = arith.constant 0 : index
        %c0_79 = arith.constant 0 : index
        %c0_80 = arith.constant 0 : index
        %103 = vector.load %arg13[%c0_78, %c0_79, %c0_80] : memref<1x16x1xf32, #tpu.memory_space<vmem>>, vector<1x16x1xf32>
        tpu.vector_store %arg13[%c0_78, %c0_79, %c0_80], %80 {strides = array<i32>} : memref<1x16x1xf32, #tpu.memory_space<vmem>>, vector<1x16x1xf32>,
      }
      %c2_i32_35 = arith.constant 2 : i32
      %c0_36 = arith.constant 0 : index
      %c0_37 = arith.constant 0 : index
      %c0_38 = arith.constant 0 : index
      %37 = vector.load %arg15[%c0_36, %c0_37, %c0_38] : memref<1x16x128xf32, #tpu.memory_space<vmem>>, vector<1x16x128xf32>
      %c0_39 = arith.constant 0 : index
      %c0_40 = arith.constant 0 : index
      %c0_41 = arith.constant 0 : index
      %38 = vector.load %arg14[%c0_39, %c0_40, %c0_41] : memref<1x16x1xf32, #tpu.memory_space<vmem>>, vector<1x16x1xf32>
      %39 = tpu.reciprocal %38 {approx = true} : vector<1x16x1xf32> -> vector<1x16x1xf32>
      %40 = vector.broadcast %39 : vector<1x16x1xf32> to vector<1x16x128xf32>
      %41 = arith.mulf %37, %40 : vector<1x16x128xf32>
      %c0_42 = arith.constant 0 : index
      %c0_43 = arith.constant 0 : index
      %42 = vector.load %arg12[%c0_42, %c0_43] : memref<16x128xbf16, #tpu.memory_space<vmem>>, vector<16x128xbf16>
      %43 = vector.shape_cast %42 : vector<16x128xbf16> to vector<1x16x128xbf16>
      %44 = arith.extf %43 : vector<1x16x128xbf16> to vector<1x16x128xf32>
      %45 = arith.addf %41, %44 : vector<1x16x128xf32>
      %46 = math.tanh %45 : vector<1x16x128xf32>
      %47 = vector.shape_cast %46 : vector<1x16x128xf32> to vector<16x128xf32>
      %48 = arith.truncf %47 : vector<16x128xf32> to vector<16x128xbf16>
      %c0_44 = arith.constant 0 : index
      %c0_45 = arith.constant 0 : index
      %49 = vector.load %arg12[%c0_44, %c0_45] : memref<16x128xbf16, #tpu.memory_space<vmem>>, vector<16x128xbf16>
      tpu.vector_store %arg12[%c0_44, %c0_45], %48 {strides = array<i32>} : memref<16x128xbf16, #tpu.memory_space<vmem>>, vector<16x128xbf16>,
    } else {
    }
    %c0 = arith.constant 0 : index
    %c0_1 = arith.constant 0 : index
    %3 = vector.load %arg12[%c0, %c0_1] : memref<16x128xbf16, #tpu.memory_space<vmem>>, vector<16x128xbf16>
    %c0_2 = arith.constant 0 : index
    %c0_3 = arith.constant 0 : index
    %4 = vector.load %arg9[%c0_2, %c0_3] : memref<128x1024xbf16, #tpu.memory_space<vmem>>, vector<128x1024xbf16>
    %cst = arith.constant dense<0.000000e+00> : vector<16x1024xf32>
    %5 = tpu.matmul %3, %4, %cst {dimension_numbers = #tpu.dot_dimension_numbers<[1], [0], [0], [1], [0, 0, 1, 1], [], []>} : vector<16x128xbf16>, vector<128x1024xbf16>, vector<16x1024xf32> -> vector<16x1024xf32>
    %c0_4 = arith.constant 0 : index
    %c0_5 = arith.constant 0 : index
    %6 = vector.load %arg10[%c0_4, %c0_5] : memref<1x1024xf32, #tpu.memory_space<vmem>>, vector<1x1024xf32>
    %7 = vector.broadcast %6 : vector<1x1024xf32> to vector<16x1024xf32>
    %8 = arith.addf %5, %7 : vector<16x1024xf32>
    %c0_6 = arith.constant 0 : index
    %c0_7 = arith.constant 0 : index
    %9 = vector.load %arg11[%c0_6, %c0_7] : memref<16x1024xf32, #tpu.memory_space<vmem>>, vector<16x1024xf32>
    tpu.vector_store %arg11[%c0_6, %c0_7], %8 {strides = array<i32>} : memref<16x1024xf32, #tpu.memory_space<vmem>>, vector<16x1024xf32>,
    return
  }
  func.func @transform_0(%arg0: i32, %arg1: i32, %arg2: memref<2xi32, #tpu.memory_space<smem>>) -> (i32, i32, i32) {
    %c0_i32 = arith.constant 0 : i32
    %c0_i32_0 = arith.constant 0 : i32
    %c0_i32_1 = arith.constant 0 : i32
    return %arg0, %c0_i32, %c0_i32_0 : i32, i32, i32
  }
  func.func @transform_1(%arg0: i32, %arg1: i32, %arg2: memref<2xi32, #tpu.memory_space<smem>>) -> (i32, i32, i32) {
    %c0_i32 = arith.constant 0 : i32
    %c0_i32_0 = arith.constant 0 : i32
    %c0_i32_1 = arith.constant 0 : i32
    return %arg0, %c0_i32, %c0_i32_0 : i32, i32, i32
  }
  func.func @transform_2(%arg0: i32, %arg1: i32, %arg2: memref<2xi32, #tpu.memory_space<smem>>) -> (i32, i32) {
    %c0_i32 = arith.constant 0 : i32
    %c0_i32_0 = arith.constant 0 : i32
    %c0_i32_1 = arith.constant 0 : i32
    return %c0_i32, %c0_i32_0 : i32, i32
  }
  func.func @transform_3(%arg0: i32, %arg1: i32, %arg2: memref<2xi32, #tpu.memory_space<smem>>) -> (i32, i32) {
    %c0_i32 = arith.constant 0 : i32
    %c0_i32_0 = arith.constant 0 : i32
    %c0_i32_1 = arith.constant 0 : i32
    return %c0_i32, %c0_i32_0 : i32, i32
  }
  func.func @transform_4(%arg0: i32, %arg1: i32, %arg2: memref<2xi32, #tpu.memory_space<smem>>) -> (i32, i32) {
    %c0_i32 = arith.constant 0 : i32
    %c0_i32_0 = arith.constant 0 : i32
    %c0_i32_1 = arith.constant 0 : i32
    return %c0_i32, %c0_i32_0 : i32, i32
  }
  func.func @transform_5(%arg0: i32, %arg1: i32, %arg2: memref<2xi32, #tpu.memory_space<smem>>) -> (i32, i32) {
    %c0_i32 = arith.constant 0 : i32
    %c0_i32_0 = arith.constant 0 : i32
    %c0_i32_1 = arith.constant 0 : i32
    return %c0_i32, %c0_i32_0 : i32, i32
  }
  func.func @transform_6(%arg0: i32, %arg1: i32, %arg2: memref<2xi32, #tpu.memory_space<smem>>) -> (i32, i32) {
    %c0_i32 = arith.constant 0 : i32
    %c0_i32_0 = arith.constant 0 : i32
    return %c0_i32, %arg1 : i32, i32
  }
  func.func @transform_7(%arg0: i32, %arg1: i32, %arg2: memref<2xi32, #tpu.memory_space<smem>>) -> (i32, i32) {
    %c0_i32 = arith.constant 0 : i32
    %c0_i32_0 = arith.constant 0 : i32
    return %c0_i32, %arg1 : i32, i32
  }
  func.func @transform_8(%arg0: i32, %arg1: i32, %arg2: memref<2xi32, #tpu.memory_space<smem>>) -> (i32, i32) {
    %c0_i32 = arith.constant 0 : i32
    return %arg0, %arg1 : i32, i32
  }
}

</mosaic_0001>

<bundles_post_ra>
// kernel: tpu_custom_call.1
= control target key start
LH: loop header
LB: loop body
LE: loop exit
PB: predicated region body
PF: predicated region fallthrough
CT: control target
= control target key end

     0   :  { %s2827_s30 = smov [#allocation7]   ;;  %s3470_s0 = inlined_call_operand.hbm [shape: s32[2], index: 0, kind: input, shape index: {}]   ;;  %s3471_s1 = inlined_call_operand.hbm [shape: bf16[2,256,128], index: 1, kind: input, shape index: {}]   ;;  %s3472_s2 = inlined_call_operand.hbm [shape: bf16[2,16,128], index: 2, kind: input, shape index: {}]   ;;  %s3473_s3 = inlined_call_operand.hbm [shape: bf16[128,128], index: 3, kind: input, shape index: {}]   ;;  %s3474_s4 = inlined_call_operand.vmem [shape: f32[1,128], index: 4, kind: input, shape index: {}]   ;;  %s3475_s5 = inlined_call_operand.hbm [shape: bf16[128,128], index: 5, kind: input, shape index: {}]   ;;  %s3476_s6 = inlined_call_operand.vmem [shape: f32[1,128], index: 6, kind: input, shape index: {}]   ;;  %s3477_s7 = inlined_call_operand.hbm [shape: bf16[128,2048], index: 7, kind: input, shape index: {}]   ;;  %s3478_s8 = inlined_call_operand.hbm [shape: f32[1,2048], index: 8, kind: input, shape index: {}]   ;;  %s3479_s9 = inlined_call_operand.hbm [shape: f32[32,2048], index: 9, kind: output, shape index: {}]  }
   0x1   :  { %3505 = sst [smem:[#allocation42_spill]] %s3471_s1 }
   0x2   :  { %3506 = sst [smem:[#allocation43_spill]] %s3473_s3 }
   0x3   :  { %3507 = sst [smem:[#allocation44_spill]] %s3474_s4 }
   0x4   :  { %3508 = sst [smem:[#allocation45_spill]] %s3476_s6 }
   0x5   :  { %3509 = sst [smem:[#allocation46_spill]] %s3479_s9 }
   0x6   :  { %15 = dma.hbm_to_smem %s3470_s0, 16, %s2827_s30, [#allocation6] }
   0x7   :  { %2737 = dma.done.wait [#allocation6], 16 }
   0x8   :  { %2738 = vsyncadd [#allocation6], 4294967280 }
   0x9   :  { %17 = sfence }
   0xa   :  { %18 = vsyncpa [#allocation9], 0 }
   0xb   :  { %20 = vsyncpa [#allocation9 + $0x1], 0 }
   0xc   :  { %21 = vsyncpa [#allocation12], 0 }
   0xd   :  { %23 = vsyncpa [#allocation12 + $0x1], 0 }
   0xe   :  { %24 = vsyncpa [#allocation15], 0 }
   0xf   :  { %25 = vsyncpa [#allocation10], 0 }
  0x10   :  { %27 = vsyncpa [#allocation10 + $0x1], 0  ;;  %s2904_s12 = smov 0   ;;  %s2906_s13 = smov 0  }
  0x11   :  { %s2908_s14 = smov 0   ;;  %s2910_s15 = smov 0  }
  0x12   :  { %s2912_s16 = smov 0   ;;  %s2914_s0 = smov 0  }
  0x13   :  { %s2916_s17 = smov 0   ;;  %s2918_s18 = smov 0  }
  0x14   :  { %s2920_s19 = smov 0   ;;  %s2922_s20 = smov 0  }
  0x15   :  { %s2924_s21 = smov 0   ;;  %s2926_s22 = smov 0  }
  0x16   :  { %s2928_s23 = smov 0   ;;  %s2930_s24 = smov 0  }
  0x17 LB: > { %3510 = sst [smem:[#allocation27_spill]] %s2769_s12  ;;  %s2971_s25 = sadd.s32 4294967295, %s2821_s24   ;;  %s2821_s24 = sphi %s2930_s24, %s33_s24   ;;  %s2817_s23 = sphi %s2928_s23, %s3590_s23   ;;  %s2813_s22 = sphi %s2926_s22, %s3589_s22   ;;  %s2809_s21 = sphi %s2924_s21, %s3588_s21   ;;  %s2805_s20 = sphi %s2922_s20, %s3587_s20   ;;  %s2801_s19 = sphi %s2920_s19, %s3586_s19   ;;  %s2797_s18 = sphi %s2918_s18, %s3585_s18   ;;  %s2793_s17 = sphi %s2916_s17, %s3574_s17   ;;  %s2789_s0 = sphi %s2914_s0, %s3584_s0   ;;  %s2785_s16 = sphi %s2912_s16, %s3583_s16   ;;  %s2781_s15 = sphi %s2910_s15, %s3582_s15   ;;  %s2777_s14 = sphi %s2908_s14, %s3581_s14   ;;  %s2773_s13 = sphi %s2906_s13, %s3580_s13   ;;  %s2769_s12 = sphi %s2904_s12, %s3579_s12  }
  0x18   : > { %3511 = sst [smem:[#allocation28_spill]] %s2773_s13  ;;  %s1917_s26 = sadd.s32 4294967294, %s2821_s24  }
  0x19   : > { %3512 = sst [smem:[#allocation29_spill]] %s2785_s16  ;;  %p65_p0 = scmp.ne.s32.totalorder %s2797_s18, %s2793_s17 }
  0x1a   : > { %3513 = sst [smem:[#allocation30_spill]] %s2797_s18  ;;  %p3491_p1 = scmp.eq.s32.totalorder %s2971_s25, 0 }
  0x1b   : > { %3514 = sst [smem:[#allocation31_spill]] %s2805_s20  ;;  %p201_p4 = scmp.ne.s32.totalorder %s2785_s16, %s2781_s15 }
  0x1c   : > { %3515 = sst [smem:[#allocation32_spill]] %s2809_s21  ;;  %p2981_p3 = por %p3491_p1, %p65_p0 }
  0x1d   : > { %3516 = sst [smem:[#allocation33_spill]] %s2971_s25  ;;  %p252_p5 = scmp.ne.s32.totalorder %s2777_s14, %s2773_s13 }
  0x1e   : > { %s3517_s28 = scalar_select %p2981_p3, 1, 0 }
  0x1f   : > { %p2991_p6 = por %p201_p4, %p3491_p1  ;;  %p253_p7 = scmp.eq.s32.totalorder %s2971_s25, 3 }
  0x20   : > { %3518 = sst [smem:[#allocation34_spill]] %s3517_s28  ;;  %p258_p8 = scmp.ne.s32.totalorder %s2773_s13, %s2769_s12 }
  0x21   : > { %s3519_s30 = scalar_select %p2991_p6, 1, 0 }
  0x22   : > { %p259_p9 = scmp.eq.s32.totalorder %s1917_s26, 3  ;;  %p2998_p10 = por %p253_p7, %p252_p5 }
  0x23   : > { %3520 = sst [smem:[#allocation35_spill]] %s3519_s30  ;;  %p1918_p11 = scmp.ge.s32.totalorder %s2821_s24, 1 }
  0x24   : > { %s3521_s10 = scalar_select %p2998_p10, 1, 0 }
  0x25   : > { %p3003_p12 = por %p259_p9, %p258_p8  ;;  %p266_p13 = scmp.lt.s32.totalorder %s2821_s24, 5 }
  0x26   : > { %3522 = sst [smem:[#allocation36_spill]] %s3521_s10  ;;  %s2828_s17 = smov [#allocation13]  }
  0x27   : > { %s3523_s11 = scalar_select %p3003_p12, 1, 0 }
  0x28   : > { %p3008_p0 = pnand %p1918_p11, %p266_p13  ;;  %s278_s29 = sshll.u32 %s2828_s17, 4  ;;  %s279_s29 = int_to_ptr.vmem [resolvable:$true] %s278_s29 }
  0x29   : > { %3524 = sst [smem:[#allocation37_spill]] %s3523_s11  ;;  %s2498_s27 = scalar_lea.vmem %s279_s29, 1024 }
  0x2a   : > { %p2228_p4 = pneg %p3008_p0  ;;  %p2499_p8 = scmp.ne.s32.totalorder %s279_s29, %s2498_s27 }
  0x2b   : > { %p2506_p13 = scmp.lt.s32.totalorder %s279_s29, %s279_s29  ;;  %p2507_p2 = scmp.lt.s32.totalorder %s2498_s27, %s2498_s27 }
  0x2c   : > { %p3016_p5 = pnand %p2228_p4, %p3491_p1 }
  0x2d   : > { %p2508_p12 = por %p2507_p2, %p2506_p13 }
  0x2e   : > { %p3503_p7 = pneg %p3016_p5 }
  0x30   : > { %p2501_p9 = pnand %p2499_p8, %p3503_p7 }
  0x32   : > { %p2502_p11 = pneg %p2501_p9 }
  0x34   : > { %p2509_p10 = pnand %p2508_p12, %p2502_p11 }
  0x36   : > { %2512 = shalt.err (!%p2509_p10)
}
  0x37   : > { %s3486_s17 = smov 64   ;;  %s3488_s11 = smov 4  }
  0x38   : > { %s3527_s3 = sld [smem:[#allocation43_spill]]  ;;  %s42_s9 = sadd.s32 1, %s2813_s22 }
  0x39   : > { %p43_p2 = scmp.ge.s32.totalorder %s42_s9, 2  ;;  %s45_s10 = sadd.s32 1, %s2817_s23 }
  0x3a   : > { %s52_s4 = sadd.s32 1, %s2801_s19  ;;  %p59_p10 = scmp.ne.s32.totalorder %s2801_s19, %s2797_s18 }
  0x3b   : > { %s3592_s9 = smov (%p43_p2, %s42_s9), 0  ;;  %s3594_s10 = smov (!%p43_p2, %s45_s10), %s2817_s23 }
  0x3c   : > { %3528 = sst [smem:[#allocation38_spill]] %s3592_s9  ;;  %p60_p12 = scmp.eq.s32.totalorder %s2821_s24, 0 }
  0x3d   : > { %s185_s12 = ssub.s32 %s2813_s22, %s3592_s9  ;;  %p47_p4 = scmp.ge.s32.totalorder %s3594_s10, 2 }
  0x3e   : > { %2231 = dma.hbm_to_vmem [thread:$0]  (!%p3016_p5), %s3527_s3, 1024, %s279_s29, [#allocation12], %s3486_s17, %s3486_s17, %s3488_s11  }
  0x3f   : > { %p186_p8 = scmp.eq.s32.totalorder %s185_s12, 0  ;;  %p3044_p9 = por %p60_p12, %p59_p10 }
  0x40   : > { %p3530_p11 = scmp.ne.s32.totalorder %s2789_s0, %s2785_s16  ;;  %s3596_s10 = smov (%p47_p4, %s3594_s10), 0 }
  0x41   : > { %3532 = sst [smem:[#allocation39_spill]] %s3596_s10  ;;  %s3533_s17 = sadd.s32 1, %s2789_s0 }
  0x42   : > { %p3051_p13 = por %p3530_p11, %p60_p12  ;;  %s49_s3 = ssub.s32 %s2817_s23, %s3596_s10 }
  0x43   : > { %s3060_s11 = scalar_select %p186_p8, %s2789_s0, %s3533_s17  }
  0x44   : > { %p3504_p2 = scmp.lt.s32.totalorder %s2821_s24, 4  ;;  %p50_p10 = scmp.eq.s32.totalorder %s49_s3, 0 }
  0x45   : > { %3534 = sst [smem:[#allocation40_spill]] %s3060_s11  ;;  %s239_s9 = sor.u32 %s185_s12, %s49_s3 }
  0x46   : > { %p240_p1 = scmp.eq.s32.totalorder %s239_s9, 0  ;;  %s311_s6 = sand.u32 1, %s2821_s24  }
  0x47   : > { %s3067_s21 = scalar_select %p50_p10, %s2801_s19, %s52_s4  }
  0x48   : > { %s3536_s20 = sadd.s32 1, %s2777_s14  ;;  %s313_s30 = sand.u32 1, %s2801_s19  }
  0x49   : > { %3535 = sst [smem:[#allocation41_spill]] %s3067_s21  ;;  %s1922_s16 = sshll.u32 %s313_s30, 7 }
  0x4a   : > { %s3072_s13 = scalar_select %p240_p1, %s2777_s14, %s3536_s20  }
  0x4b   : > { %s2052_s28 = sshll.u32 %s2817_s23, 11  ;;  %s3537_s1 = sld [smem:[#allocation42_spill]] }
  0x4c   : > { %s315_s11 = scalar_lea.vmem [#allocation8], %s1922_s16  ;;  %p3083_p12 = pnand %p3504_p2, %p3044_p9 }
  0x4d   : > { %s322_s10 = sshll.u32 %s315_s11, 4  ;;  %s1925_s4 = sshll.u32 %s313_s30, 3  ;;  %s323_s10 = int_to_ptr.vmem [resolvable:$true] %s322_s10 }
  0x4e   : > { %s3089_s9 = scalar_lea.sflag [#allocation9], %s311_s6  ;;  %p2515_p1 = pneg %p3083_p12 }
  0x4f   : > { %s2526_s20 = scalar_lea.vmem %s323_s10, 2048  ;;  %s2831_s16 = smov [#allocation8]  }
  0x50   : > { %p2527_p4 = scmp.ne.s32.totalorder %s323_s10, %s2526_s20  ;;  %s2531_s18 = sshll.u32 %s2831_s16, 4  ;;  %s2532_s18 = int_to_ptr.vmem [resolvable:$false] %s2531_s18 }
  0x51   : > { %s321_s17 = scalar_lea.hbm %s3537_s1, %s2052_s28  ;;  %s2533_s25 = scalar_lea.vmem %s2532_s18, 4096 }
  0x52   : > { %p2529_p8 = pnand %p2527_p4, %p2515_p1  ;;  %p2534_p9 = scmp.lt.s32.totalorder %s323_s10, %s2532_s18 }
  0x53   : > { %p2535_p10 = scmp.lt.s32.totalorder %s2533_s25, %s2526_s20 }
  0x54   : > { %p2530_p11 = pneg %p2529_p8 }
  0x55   : > { %p2536_p7 = por %p2535_p10, %p2534_p9 }
  0x57   : > { %p2537_p2 = pnand %p2536_p7, %p2530_p11 }
  0x59   : > { %2540 = shalt.err (!%p2537_p2)
}
  0x5a   : > { %s3539_s28 = smov 4   ;;  %s3540_s30 = smov 64  }
  0x5b   : > { %2238 = dma.hbm_to_vmem [thread:$0]  (!%p3083_p12), %s321_s17, 2048, %s323_s10, %s3089_s9, %s3540_s30, %s3540_s30, %s3539_s28  }
  0x5c   : > { %p3541_p4 = scmp.lt.s32.totalorder %s2821_s24, 4  ;;  %s336_s12 = scalar_lea.vmem [#allocation11], %s1925_s4 }
  0x5d   : > { %s343_s29 = sshll.u32 %s336_s12, 4  ;;  %s2053_s20 = sshll.u32 %s2817_s23, 7  ;;  %s344_s29 = int_to_ptr.vmem [resolvable:$true] %s343_s29 }
  0x5e   : > { %p3106_p8 = pnand %p3541_p4, %p3051_p13  ;;  %s342_s25 = scalar_lea.hbm %s3472_s2, %s2053_s20 }
  0x5f   : > { %s3116_s1 = scalar_lea.sflag [#allocation12], %s311_s6  ;;  %s2554_s21 = scalar_lea.vmem %s344_s29, 128 }
  0x60   : > { %p2555_p7 = scmp.ne.s32.totalorder %s344_s29, %s2554_s21  ;;  %s2832_s10 = smov [#allocation11]  }
  0x61   : > { %s2559_s27 = sshll.u32 %s2832_s10, 4  ;;  %s2560_s27 = int_to_ptr.vmem [resolvable:$false] %s2559_s27 }
  0x62   : > { %p2557_p2 = pnand %p2555_p7, %p2515_p1  ;;  %s2561_s17 = scalar_lea.vmem %s2560_s27, 256 }
  0x63   : > { %p2562_p11 = scmp.lt.s32.totalorder %s344_s29, %s2560_s27  ;;  %p2563_p9 = scmp.lt.s32.totalorder %s2561_s17, %s2554_s21 }
  0x64   : > { %p2558_p13 = pneg %p2557_p2 }
  0x65   : > { %p2564_p10 = por %p2563_p9, %p2562_p11 }
  0x67   : > { %p2565_p4 = pnand %p2564_p10, %p2558_p13 }
  0x69   : > { %2568 = shalt.err (!%p2565_p4)
}
  0x6a   : > { %2241 = dma.hbm_to_vmem [thread:$0]  (!%p3083_p12), %s342_s25, 128, %s344_s29, %s3116_s1, %s3540_s30, %s3540_s30, %s3539_s28  }
  0x6b   : > { %s2833_s6 = smov [#allocation14]   ;;  %s355_s12 = sand.u32 1, %s2789_s0  }
  0x6c   : > { %s294_s4 = sshll.u32 %s2833_s6, 4  ;;  %s1928_s20 = sshll.u32 %s355_s12, 9  ;;  %s295_s4 = int_to_ptr.vmem [resolvable:$true] %s294_s4 }
  0x6d   : > { %s2580_s21 = scalar_lea.vmem %s295_s4, 1024  ;;  %p3543_p7 = pneg %p3016_p5 }
  0x6e   : > { %p2581_p1 = scmp.ne.s32.totalorder %s295_s4, %s2580_s21  ;;  %p2588_p11 = scmp.lt.s32.totalorder %s295_s4, %s295_s4 }
  0x6f   : > { %p2589_p9 = scmp.lt.s32.totalorder %s2580_s21, %s2580_s21 }
  0x70   : > { %p2583_p2 = pnand %p2581_p1, %p3543_p7 }
  0x71   : > { %p2590_p10 = por %p2589_p9, %p2588_p11 }
  0x72   : > { %p2584_p13 = pneg %p2583_p2 }
  0x74   : > { %p2591_p4 = pnand %p2590_p10, %p2584_p13 }
  0x76   : > { %2594 = shalt.err (!%p2591_p4)
}
  0x77   : > { %2234 = dma.hbm_to_vmem [thread:$0]  (!%p3016_p5), %s3475_s5, 1024, %s295_s4, [#allocation15], %s3540_s30, %s3540_s30, %s3539_s28  }
  0x78   : > { %s2054_s16 = sshll.u32 %s2813_s22, 9  ;;  %s357_s27 = scalar_lea.vmem [#allocation16], %s1928_s20 }
  0x79   : > { %s363_s10 = scalar_lea.hbm %s3477_s7, %s2054_s16  ;;  %s364_s17 = sshll.u32 %s357_s27, 4  ;;  %s365_s17 = int_to_ptr.vmem [resolvable:$true] %s364_s17 }
  0x7a   : > { %p2597_p12 = pneg %p3106_p8  ;;  %s2608_s26 = scalar_lea.vmem %s365_s17, 8192 }
  0x7b   : > { %p2609_p1 = scmp.ne.s32.totalorder %s365_s17, %s2608_s26  ;;  %s2834_s6 = smov [#allocation16]  }
  0x7c   : > { %s2613_s21 = sshll.u32 %s2834_s6, 4  ;;  %s2614_s21 = int_to_ptr.vmem [resolvable:$false] %s2613_s21 }
  0x7d   : > { %p2611_p7 = pnand %p2609_p1, %p2597_p12  ;;  %s2615_s28 = scalar_lea.vmem %s2614_s21, 16384 }
  0x7e   : > { %p2616_p5 = scmp.lt.s32.totalorder %s365_s17, %s2614_s21  ;;  %p2617_p13 = scmp.lt.s32.totalorder %s2615_s28, %s2608_s26 }
  0x7f   : > { %p2612_p2 = pneg %p2611_p7 }
  0x80   : > { %p2618_p11 = por %p2617_p13, %p2616_p5 }
  0x82   : > { %p2619_p9 = pnand %p2618_p11, %p2612_p2 }
  0x84   : > { %2622 = shalt.err (!%p2619_p9)
}
  0x85   : > { %s2835_s30 = smov 1024   ;;  %s2836_s4 = smov 512  }
  0x86   : > { %s2837_s20 = smov 32   ;;  %s1931_s3 = sshll.u32 %s355_s12, 3 }
  0x87   : > { %2244 = dma.hbm_to_vmem [thread:$0]  (!%p3106_p8), %s363_s10, 8192, %s365_s17, %s3089_s9, %s2835_s30, %s2836_s4, %s2837_s20  }
  0x88   : > { %s2055_s29 = sshll.u32 %s2813_s22, 7  ;;  %s378_s27 = scalar_lea.vmem [#allocation17], %s1931_s3 }
  0x89   : > { %s384_s25 = scalar_lea.hbm %s3478_s8, %s2055_s29  ;;  %s386_s26 = sshll.u32 %s378_s27, 4  ;;  %s387_s26 = int_to_ptr.vmem [resolvable:$true] %s386_s26 }
  0x8a   : > { %s2636_s6 = scalar_lea.vmem %s387_s26, 128  ;;  %s2838_s21 = smov [#allocation17]  }
  0x8b   : > { %p2637_p10 = scmp.ne.s32.totalorder %s387_s26, %s2636_s6  ;;  %s2641_s28 = sshll.u32 %s2838_s21, 4  ;;  %s2642_s28 = int_to_ptr.vmem [resolvable:$false] %s2641_s28 }
  0x8c   : > { %s2643_s9 = scalar_lea.vmem %s2642_s28, 256  ;;  %p2644_p7 = scmp.lt.s32.totalorder %s387_s26, %s2642_s28 }
  0x8d   : > { %p2639_p4 = pnand %p2637_p10, %p2597_p12  ;;  %p2645_p2 = scmp.lt.s32.totalorder %s2643_s9, %s2636_s6 }
  0x8f   : > { %p2640_p1 = pneg %p2639_p4  ;;  %p2646_p5 = por %p2645_p2, %p2644_p7 }
  0x91   : > { %p2647_p13 = pnand %p2646_p5, %p2640_p1 }
  0x93   : > { %2650 = shalt.err (!%p2647_p13)
}
  0x94   : > { %2247 = dma.hbm_to_vmem [thread:$0]  (!%p3106_p8), %s384_s25, 128, %s387_s26, %s3116_s1  }
  0x95   : > { %395 = sbr.rel (%p3008_p0) target bundleno = 1852 (0x73c), region = 52  ;;  %s3544_s12 = sld [smem:[#allocation33_spill]] (!%p3008_p0) }
  0x96   : > { %s3545_s10 = sld [smem:[#allocation30_spill]] (!%p3008_p0) }
  0x9b   : > { %s397_s30 = sand.u32 1, %s3544_s12  }
  0x9c   : > { %s399_s4 = sand.u32 1, %s3545_s10   ;;  %s398_s3 = scalar_lea.sflag [#allocation9], %s397_s30 }
  0x9d   : > { %s3169_s20 = sshll.u32 %s399_s4, 7 }
  0x9e   : > { %s401_s29 = scalar_lea.vmem [#allocation8], %s3169_s20 }
  0x9f   : > { %2740 = dma.done.wait (%p2981_p3), %s398_s3, 2048  }
  0xa0   : > { %2742 = vsyncadd (%p2981_p3), %s398_s3, 4294965248  ;;  %s3176_s1 = sshll.u32 %s399_s4, 3  ;;  %s407_s15 = scalar_lea.sflag [#allocation12], %s397_s30 }
  0xa1   : > { %s410_s11 = scalar_lea.vmem [#allocation11], %s3176_s1 }
  0xa2   : > { %2744 = dma.done.wait (%p2981_p3), %s407_s15, 128  }
  0xa3   : > { %2746 = vsyncadd (%p2981_p3), %s407_s15, 4294967168  ;;  %p3547_p0 = scmp.eq.s32.totalorder %s3544_s12, 0 }
  0xa5   : > { %2748 = dma.done.wait (%p3547_p0), [#allocation12], 1024   ;;  %p3548_p8 = pmov %p3547_p0 }
  0xa6   : > { %p3549_p12 = pmov %p3547_p0 }
  0xa7   : > { %2750 = vsyncadd (%p3548_p8), [#allocation12], 4294966272 }
  0xa8   : > { %2752 = dma.done.wait (%p3549_p12), [#allocation15], 1024   ;;  %p3550_p11 = pmov %p3547_p0 }
  0xa9   : > { %s3551_s16 = sld [smem:[#allocation29_spill]] }
  0xaa   : > { %2754 = vsyncadd (%p3550_p11), [#allocation15], 4294966272 }
  0xaf   : > { %s425_s25 = sand.u32 1, %s3551_s16  }
  0xb0   : > { %s1939_s27 = sshll.u32 %s425_s25, 9 }
  0xb1   : > { %s3192_s26 = scalar_lea.vmem [#allocation16], %s1939_s27 }
  0xb2   : > { %2756 = dma.done.wait (%p2991_p6), %s398_s3, 8192  }
  0xb3   : > { %2758 = vsyncadd (%p2991_p6), %s398_s3, 4294959104  ;;  %s3198_s6 = sshll.u32 %s425_s25, 3 }
  0xb4   : > { %s436_s21 = scalar_lea.vmem [#allocation17], %s3198_s6 }
  0xb5   : > { %2760 = dma.done.wait (%p2991_p6), %s407_s15, 128  }
  0xb6   : > { %2762 = vsyncadd (%p2991_p6), %s407_s15, 4294967168  ;;  %s3553_s28 = sld [smem:[#allocation28_spill]] }
  0xb7   : > { %s3554_s17 = sld [smem:[#allocation31_spill]] }
  0xbc   : > { %s481_s9 = sand.u32 1, %s3553_s28  }
  0xbd   : > { %s1941_s12 = sshll.u32 %s481_s9, 7  ;;  %p1942_p3 = scmp.ne.s32.totalorder %s3554_s17, 0 }
  0xbe   : > { %s3208_s10 = scalar_lea.vmem [#allocation18], %s1941_s12  ;;  %s3555_s30 = sld [smem:[#allocation32_spill]] (!%p1942_p3) }
  0xbf   : > { %492 = sbr.rel (%p1942_p3) target bundleno = 1568 (0x620), region = 80  ;;  %s3556_s16 = sld [smem:[#allocation45_spill]] (!%p1942_p3) }
  0xc0   : > { %s3224_s1 = smov (!%p1942_p3), 0  }
  0xc4   : > { %vm627_vm0 = vcmask 7168   ;;  %v2839_v0 = vmov 0.0   ;;  %v2840_v1 = vmov -1e+30   ;;  %v2397_v2 = vld [vmem:[#allocation14 + $0x38] sm:$0xff]   ;;  %vm2841_vm1 = vmmov 0  }
  0xc5   : > { %2118 = vmatprep.subr.bf16.mxu0 %v2839_v0  ;;  %628 = vst.msk [vmem:[#allocation3] sm:$0xff] %vm627_vm0, %v2840_v1  ;;  %629 = vst.msk [vmem:[#allocation3 + $0x8] sm:$0xff] %vm627_vm0, %v2840_v1  ;;  %2134 = vmatprep.mubr.msk.bf16.mxu0 %vm2841_vm1, %v2839_v0  ;;  %v2398_v3 = vld [vmem:[#allocation14 + $0x30] sm:$0xff]   ;;  %v2399_v4 = vld [vmem:[#allocation14 + $0x28] sm:$0xff]   ;;  %s3218_s4 = sld [smem:[#allocation7 + %s3555_s30]] }
  0xc6   : > { %630 = vst.msk [vmem:[#allocation4] sm:$0xff] %vm627_vm0, %v2839_v0  ;;  %631 = vst.msk [vmem:[#allocation4 + $0x8] sm:$0xff] %vm627_vm0, %v2839_v0  ;;  %2119 = vmatpush3.bf16.msra.mxu0 %v2397_v2  ;;  %v2400_v5 = vld [vmem:[#allocation14 + $0x20] sm:$0xff]   ;;  %v2401_v6 = vld [vmem:[#allocation14 + $0x18] sm:$0xff]  }
  0xc7   : > { %632 = vst [vmem:[#allocation5] sm:$0xff] %v2839_v0  ;;  %633 = vst [vmem:[#allocation5 + $0x8] sm:$0xff] %v2839_v0  ;;  %2120 = vmatprep.subr.bf16.mxu0 %v2839_v0  ;;  %v2402_v7 = vld [vmem:[#allocation14 + $0x10] sm:$0xff]   ;;  %v2403_v8 = vld [vmem:[#allocation14 + $0x8] sm:$0xff]  }
  0xc8   : > { %v2404_v9 = vld [vmem:[#allocation14] sm:$0xff]   ;;  %v2405_v10 = vld [vmem:[%s410_s11] sm:$0xff]  }
  0xc9   : > { %v1943_v12 = vld [vmem:[%s3556_s16] ss:$0 sm:$0xff] }
  0xca   : > { %2121 = vmatpush3.bf16.msra.mxu0 %v2398_v3 }
  0xcb   : > { %2122 = vmatprep.subr.bf16.mxu0 %v2839_v0  ;;  %v626_v11 = vstv %s3218_s4 }
  0xce   : > { %2123 = vmatpush3.bf16.msra.mxu0 %v2399_v4 }
  0xcf   : > { %2124 = vmatprep.subr.bf16.mxu0 %v2839_v0 }
  0xd2   : > { %2125 = vmatpush3.bf16.msra.mxu0 %v2400_v5 }
  0xd3   : > { %2126 = vmatprep.subr.bf16.mxu0 %v2839_v0 }
  0xd6   : > { %2127 = vmatpush3.bf16.msra.mxu0 %v2401_v6 }
  0xd7   : > { %2128 = vmatprep.subr.bf16.mxu0 %v2839_v0 }
  0xda   : > { %2129 = vmatpush3.bf16.msra.mxu0 %v2402_v7 }
  0xdb   : > { %2130 = vmatprep.subr.bf16.mxu0 %v2839_v0 }
  0xde   : > { %2131 = vmatpush3.bf16.msra.mxu0 %v2403_v8 }
  0xdf   : > { %2132 = vmatprep.subr.bf16.mxu0 %v2839_v0 }
  0xe2   : > { %2133 = vmatpush3.bf16.msra.mxu0 %v2404_v9 }
  0xe5   : > { %2135 = vmatmul.mubr.bf16.vlgmr.msra.gmra.mxu0 %v2405_v10 }
 0x1a5   : > { %v606_v13 = vpop.f32.mrf.mxu0 }
 0x1a6   : > { %v607_v14 = vadd.f32 %v1943_v12, %v606_v13 }
 0x1a7   : > { %v2136_v15 = vpop.f32.mrf.mxu0 }
 0x1a8   : > { %2406 = vtanh.f32 %v607_v14 }
 0x1a9   : > { %v609_v16 = vpop.f32.mrf.mxu0 }
 0x1aa   : > { %v610_v17 = vadd.f32 %v1943_v12, %v609_v16 }
 0x1ab   : > { %v2137_v18 = vpop.f32.mrf.mxu0 }
 0x1ac   : > { %2408 = vtanh.f32 %v610_v17 }
 0x1b5   : > { %v2407_v19 = vpop.eup %2406 }
 0x1b9   : > { %v2409_v20 = vpop.eup %2408 }
 0x1ba   : > { %v2064_v21 = vpack.c.bf16 %v2409_v20, %v2407_v19 }
 0x1bc   : > { %2065 = vst [vmem:[#allocation2] sm:$0xff] %v2064_v21  }
 0x1bd LB: >> { %v2412_v22 = vld [vmem:[#allocation13 + $0x38] sm:$0xff]   ;;  %v2413_v23 = vld [vmem:[#allocation13 + $0x30] sm:$0xff]   ;;  %s1955_s11 = sshll.u32 %s2825_s1, 7  ;;  %v2414_v24 = vld [vmem:[#allocation13 + $0x28] sm:$0xff]   ;;  %v2842_v38 = vmov 0.0   ;;  %vm2843_vm2 = vmmov 0   ;;  %s2825_s1 = sphi %s3224_s1, %s639_s1  }
 0x1be   : >> { %2138 = vmatprep.subr.bf16.mxu0 %v2412_v22  ;;  %s641_s18 = sshra.s32 %s1955_s11, 3  ;;  %v2415_v25 = vld [vmem:[#allocation13 + $0x20] sm:$0xff]   ;;  %v2416_v27 = vld [vmem:[#allocation13 + $0x18] sm:$0xff]   ;;  %v2417_v28 = vld [vmem:[#allocation13 + $0x10] sm:$0xff]   ;;  %2170 = vmatprep.subr.bf16.mxu1 %v2842_v38  ;;  %s3557_s17 = sld [smem:[#allocation44_spill]] }
 0x1bf   : >> { %2139 = vmatpush3.bf16.msra.mxu0 %v2412_v22  ;;  %s1956_s25 = sshll.u32 %s641_s18, 2  ;;  %v2418_v29 = vld [vmem:[#allocation13 + $0x8] sm:$0xff]   ;;  %v2419_v30 = vld [vmem:[#allocation13] sm:$0xff]   ;;  %2186 = vmatprep.mubr.msk.bf16.mxu1 %vm2843_vm2, %v2842_v38  ;;  %s639_s1 = sadd.s32 1, %s2825_s1  }
 0x1c0   : >> { %2140 = vmatprep.subr.bf16.mxu0 %v2413_v23  ;;  %s3234_s27 = scalar_lea.vmem %s401_s29, %s1956_s25 [#allocation8]  ;;  %p636_p6 = scmp.ge.s32.totalorder %s639_s1, 2  }
 0x1c1   : >> { %v2420_v26 = vld [vmem:[%s3234_s27] sm:$0xff]   ;;  %v2421_v31 = vld [vmem:[%s3234_s27 + $0x8] sm:$0xff]   ;;  %v2422_v32 = vld [vmem:[%s3234_s27 + $0x10] sm:$0xff]  }
 0x1c2   : >> { %2154 = vmatprep.mubr.bf16.mxu0 %v2420_v26  ;;  %v2423_v33 = vld [vmem:[%s3234_s27 + $0x18] sm:$0xff]   ;;  %v2424_v34 = vld [vmem:[%s3234_s27 + $0x20] sm:$0xff]   ;;  %v2425_v35 = vld [vmem:[%s3234_s27 + $0x28] sm:$0xff]  }
 0x1c3   : >> { %2141 = vmatpush3.bf16.msra.mxu0 %v2413_v23  ;;  %v2426_v36 = vld [vmem:[%s3234_s27 + $0x30] sm:$0xff]   ;;  %v2427_v37 = vld [vmem:[%s3234_s27 + $0x38] sm:$0xff]  }
 0x1c4   : >> { %2142 = vmatprep.subr.bf16.mxu0 %v2414_v24  ;;  %v1957_v52 = vld [vmem:[%s3557_s17] ss:$0 sm:$0xff] }
 0x1c7   : >> { %2143 = vmatpush3.bf16.msra.mxu0 %v2414_v24 }
 0x1c8   : >> { %2144 = vmatprep.subr.bf16.mxu0 %v2415_v25 }
 0x1cb   : >> { %2145 = vmatpush3.bf16.msra.mxu0 %v2415_v25 }
 0x1cc   : >> { %2146 = vmatprep.subr.bf16.mxu0 %v2416_v27 }
 0x1cf   : >> { %2147 = vmatpush3.bf16.msra.mxu0 %v2416_v27 }
 0x1d0   : >> { %2148 = vmatprep.subr.bf16.mxu0 %v2417_v28 }
 0x1d3   : >> { %2149 = vmatpush3.bf16.msra.mxu0 %v2417_v28 }
 0x1d4   : >> { %2150 = vmatprep.subr.bf16.mxu0 %v2418_v29 }
 0x1d7   : >> { %2151 = vmatpush3.bf16.msra.mxu0 %v2418_v29 }
 0x1d8   : >> { %2152 = vmatprep.subr.bf16.mxu0 %v2419_v30 }
 0x1db   : >> { %2153 = vmatpush3.bf16.msra.mxu0 %v2419_v30 }
 0x1dc   : >> { %2190 = vmatprep.subr.bf16.mxu0 %v2842_v38 }
 0x1de   : >> { %2155 = vmatmul.mubr.bf16.vlgmr.msra.gmra.mxu0 %v2421_v31 }
 0x1df   : >> { %2158 = vmatprep.mubr.bf16.mxu0 %v2422_v32 }
 0x1e6   : >> { %2159 = vmatmul.mubr.bf16.gmra.mxu0 %v2423_v33  ;;  %v2428_v33 = vld [vmem:[#allocation2] sm:$0xff]  }
 0x1e7   : >> { %2162 = vmatprep.mubr.bf16.mxu0 %v2424_v34  ;;  %v950_v34 = vlaneseq }
 0x1ee   : >> { %2163 = vmatmul.mubr.bf16.gmra.mxu0 %v2425_v35  ;;  %v951_v35 = vand.u32 127, %v950_v34 }
 0x1ef   : >> { %2166 = vmatprep.mubr.bf16.mxu0 %v2426_v36  ;;  %v952_v36 = vstv %s1955_s11 }
 0x1f6   : >> { %2167 = vmatmul.mubr.bf16.gmra.mxu0 %v2427_v37  ;;  %v953_v37 = vadd.s32 %v952_v36, %v951_v35 }
 0x1f7   : >> { %2206 = vmatprep.mubr.msk.bf16.mxu0 %vm2843_vm2, %v2842_v38 }
 0x1f8   : >> { %vm3269_vm3 = vcmp.lt.s32.totalorder %v953_v37, %v626_v11 }
 0x1f9   : >> { %vm1975_vm4 = vmpackc.low %vm3269_vm3, %vm3269_vm3 }
 0x29e   : >> { %v2156_v39 = vpop.f32.mrf.mxu0 }
 0x29f   : >> { %v823_v13 = vadd.f32 %v2156_v39, %v1957_v52 }
 0x2a0   : >> { %v814_v40 = vpop.f32.mrf.mxu0 }
 0x2a1   : >> { %v815_v18 = vadd.f32 %v1957_v52, %v814_v40 }
 0x2a2   : >> { %v2157_v41 = vpop.f32.mrf.mxu0 }
 0x2a3   : >> { %v826_v9 = vadd.f32 %v2157_v41, %v1957_v52 }
 0x2a4   : >> { %v817_v42 = vpop.f32.mrf.mxu0 }
 0x2a5   : >> { %v818_v15 = vadd.f32 %v1957_v52, %v817_v42 }
 0x2a6   : >> { %v2160_v43 = vpop.f32.mrf.mxu0 }
 0x2a7   : >> { %v839_v2 = vadd.f32 %v2160_v43, %v1957_v52 }
 0x2a8   : >> { %v830_v44 = vpop.f32.mrf.mxu0 }
 0x2a9   : >> { %v831_v7 = vadd.f32 %v1957_v52, %v830_v44 }
 0x2aa   : >> { %v2161_v45 = vpop.f32.mrf.mxu0 }
 0x2ab   : >> { %v842_v0 = vadd.f32 %v2161_v45, %v1957_v52  ;;  %v2844_v45 = vmov 0  }
 0x2ac   : >> { %v833_v46 = vpop.f32.mrf.mxu0  ;;  %2410 = vset.pattern.permute.xlu1 %v2844_v45  ;;  %2411 = vset.pattern.permute.xlu0 %v2844_v45 }
 0x2ad   : >> { %v834_v4 = vadd.f32 %v1957_v52, %v833_v46  ;;  %v959_v46 = vld [vmem:[#allocation3] sm:$0xff] }
 0x2ae   : >> { %v2164_v47 = vpop.f32.mrf.mxu0 }
 0x2af   : >> { %v855_v61 = vadd.f32 %v2164_v47, %v1957_v52 }
 0x2b0   : >> { %v846_v48 = vpop.f32.mrf.mxu0 }
 0x2b1   : >> { %v847_v63 = vadd.f32 %v1957_v52, %v846_v48 }
 0x2b2   : >> { %v2165_v49 = vpop.f32.mrf.mxu0 }
 0x2b3   : >> { %v858_v60 = vadd.f32 %v2165_v49, %v1957_v52  ;;  %v960_v49 = vld [vmem:[#allocation3 + $0x8] sm:$0xff] }
 0x2b4   : >> { %v849_v50 = vpop.f32.mrf.mxu0 }
 0x2b5   : >> { %v850_v62 = vadd.f32 %v1957_v52, %v849_v50 }
 0x2b6   : >> { %v2168_v51 = vpop.f32.mrf.mxu0 }
 0x2b7   : >> { %v871_v53 = vadd.f32 %v2168_v51, %v1957_v52 }
 0x2b8   : >> { %v862_v54 = vpop.f32.mrf.mxu0 }
 0x2b9   : >> { %2429 = vtanh.f32 %v871_v53  ;;  %v863_v58 = vadd.f32 %v1957_v52, %v862_v54 }
 0x2ba   : >> { %v2169_v55 = vpop.f32.mrf.mxu0 }
 0x2bb   : >> { %v874_v56 = vadd.f32 %v2169_v55, %v1957_v52 }
 0x2bc   : >> { %v865_v57 = vpop.f32.mrf.mxu0 }
 0x2bd   : >> { %2431 = vtanh.f32 %v874_v56  ;;  %v866_v59 = vadd.f32 %v1957_v52, %v865_v57 }
 0x2bf   : >> { %2433 = vtanh.f32 %v866_v59 }
 0x2c0   : >> { %2435 = vtanh.f32 %v863_v58 }
 0x2c1   : >> { %2437 = vtanh.f32 %v858_v60 }
 0x2c2   : >> { %2439 = vtanh.f32 %v855_v61 }
 0x2c3   : >> { %2441 = vtanh.f32 %v850_v62 }
 0x2c4   : >> { %2443 = vtanh.f32 %v847_v63 }
 0x2c5   : >> { %2445 = vtanh.f32 %v842_v0 }
 0x2c6   : >> { %v2430_v1 = vpop.eup %2429  ;;  %2447 = vtanh.f32 %v839_v2 }
 0x2c7   : >> { %2449 = vtanh.f32 %v834_v4 }
 0x2c8   : >> { %2451 = vtanh.f32 %v831_v7 }
 0x2c9   : >> { %2453 = vtanh.f32 %v826_v9 }
 0x2ca   : >> { %v2432_v3 = vpop.eup %2431  ;;  %2455 = vtanh.f32 %v823_v13 }
 0x2cb   : >> { %v900_v5 = vpack.c.bf16 %v2432_v3, %v2430_v1  ;;  %2457 = vtanh.f32 %v818_v15 }
 0x2cc   : >> { %v2434_v6 = vpop.eup %2433  ;;  %2459 = vtanh.f32 %v815_v18 }
 0x2cd   : >> { %2171 = vmatpush3.bf16.xpose.msra.mxu1 %v900_v5  ;;  %2191 = vmatpush3.bf16.msra.mxu0 %v900_v5  ;;  %v2436_v8 = vpop.eup %2435  ;;  %v991_v5 = vld [vmem:[#allocation4] sm:$0xff] }
 0x2ce   : >> { %2192 = vmatprep.subr.bf16.mxu0 %v2842_v38  ;;  %2172 = vmatprep.subr.bf16.mxu1 %v2842_v38  ;;  %v899_v10 = vpack.c.bf16 %v2434_v6, %v2436_v8  ;;  %v2438_v12 = vpop.eup %2437  ;;  %v992_v8 = vld [vmem:[#allocation4 + $0x8] sm:$0xff] }
 0x2cf   : >> { %v2440_v14 = vpop.eup %2439 }
 0x2d0   : >> { %v898_v16 = vpack.c.bf16 %v2438_v12, %v2440_v14  ;;  %v2442_v17 = vpop.eup %2441  ;;  %v1003_v14 = vld [vmem:[#allocation5] sm:$0xff] }
 0x2d1   : >> { %2193 = vmatpush3.bf16.msra.mxu0 %v899_v10  ;;  %v2444_v19 = vpop.eup %2443 }
 0x2d2   : >> { %2194 = vmatprep.subr.bf16.mxu0 %v2842_v38  ;;  %v897_v20 = vpack.c.bf16 %v2442_v17, %v2444_v19  ;;  %v2446_v21 = vpop.eup %2445  ;;  %v1004_v17 = vld [vmem:[#allocation5 + $0x8] sm:$0xff] }
 0x2d3   : >> { %v2448_v22 = vpop.eup %2447 }
 0x2d4   : >> { %v896_v23 = vpack.c.bf16 %v2446_v21, %v2448_v22  ;;  %v2450_v24 = vpop.eup %2449 }
 0x2d5   : >> { %2173 = vmatpush3.bf16.xpose.msra.mxu1 %v899_v10  ;;  %2195 = vmatpush3.bf16.msra.mxu0 %v898_v16  ;;  %v2452_v25 = vpop.eup %2451 }
 0x2d6   : >> { %2196 = vmatprep.subr.bf16.mxu0 %v2842_v38  ;;  %2174 = vmatprep.subr.bf16.mxu1 %v2842_v38  ;;  %v895_v26 = vpack.c.bf16 %v2450_v24, %v2452_v25  ;;  %v2454_v27 = vpop.eup %2453 }
 0x2d7   : >> { %v2456_v28 = vpop.eup %2455 }
 0x2d8   : >> { %v894_v29 = vpack.c.bf16 %v2454_v27, %v2456_v28  ;;  %v2458_v30 = vpop.eup %2457  ;;  %v2845_v28 = vmov (%p636_p6), 0  }
 0x2d9   : >> { %2197 = vmatpush3.bf16.msra.mxu0 %v897_v20  ;;  %v2460_v31 = vpop.eup %2459 }
 0x2da   : >> { %2198 = vmatprep.subr.bf16.mxu0 %v2842_v38  ;;  %v893_v32 = vpack.c.bf16 %v2458_v30, %v2460_v31  ;;  %v2067_v31 = vld [vmem:[#allocation2] sm:$0xff] (%p636_p6)  }
 0x2db   : > { %v2069_v37 = vunpack.c.h.bf16 (%p636_p6), %v2067_v31 }
 0x2dd   : >> { %2175 = vmatpush3.bf16.xpose.msra.mxu1 %v898_v16  ;;  %2199 = vmatpush3.bf16.msra.mxu0 %v896_v23 }
 0x2de   : >> { %2200 = vmatprep.subr.bf16.mxu0 %v2842_v38  ;;  %2176 = vmatprep.subr.bf16.mxu1 %v2842_v38 }
 0x2e1   : >> { %2201 = vmatpush3.bf16.msra.mxu0 %v895_v26 }
 0x2e2   : >> { %2202 = vmatprep.subr.bf16.mxu0 %v2842_v38 }
 0x2e5   : >> { %2177 = vmatpush3.bf16.xpose.msra.mxu1 %v897_v20  ;;  %2203 = vmatpush3.bf16.msra.mxu0 %v894_v29 }
 0x2e6   : >> { %2204 = vmatprep.subr.bf16.mxu0 %v2842_v38  ;;  %2178 = vmatprep.subr.bf16.mxu1 %v2842_v38 }
 0x2e9   : >> { %2205 = vmatpush3.bf16.msra.mxu0 %v893_v32 }
 0x2ed   : >> { %2179 = vmatpush3.bf16.xpose.msra.mxu1 %v896_v23 }
 0x2ee   : >> { %2180 = vmatprep.subr.bf16.mxu1 %v2842_v38 }
 0x2f5   : >> { %2181 = vmatpush3.bf16.xpose.msra.mxu1 %v895_v26 }
 0x2f6   : >> { %2182 = vmatprep.subr.bf16.mxu1 %v2842_v38 }
 0x2fd   : >> { %2183 = vmatpush3.bf16.xpose.msra.mxu1 %v894_v29 }
 0x2fe   : >> { %2184 = vmatprep.subr.bf16.mxu1 %v2842_v38 }
 0x305   : >> { %2185 = vmatpush3.bf16.xpose.msra.mxu1 %v893_v32 }
 0x30c   : >> { %2187 = vmatmul.mubr.bf16.vlgmr.msra.gmra.mxu1 %v2428_v33  ;;  %v2068_v33 = vunpack.c.l.bf16 (%p636_p6), %v2067_v31 }
 0x3cc   : >> { %v943_v40 = vpop.f32.mrf.mxu1 }
 0x3cd   : >> { %v957_v41 = vsel %vm3269_vm3, %v943_v40, -1e+30 }
 0x3ce   : >> { %961 = vmax.xlane.f32.xlu0 %v957_v41  ;;  %v2188_v42 = vpop.f32.mrf.mxu1 }
 0x3d0   : >> { %v946_v38 = vpop.f32.mrf.mxu1 }
 0x3d1   : >> { %v958_v43 = vsel %vm3269_vm3, %v946_v38, -1e+30 }
 0x3d2   : >> { %963 = vmax.xlane.f32.xlu0 %v958_v43  ;;  %v2189_v44 = vpop.f32.mrf.mxu1 }
 0x457   : >> { %v962_v47 = vpop.xlane.xlu0 %961 }
 0x458   : >> { %v965_v48 = vmax.f32 %v959_v46, %v962_v47 }
 0x45a   : >> { %v967_v50 = vsub.f32 %v959_v46, %v965_v48  ;;  %1063 = vst.msk [vmem:[#allocation3] sm:$0xff] %vm627_vm0, %v965_v48  ;;  %975 = vperm.xlu1 %2410, %v965_v48  }
 0x45b   : >> { %v964_v51 = vpop.xlane.xlu0 %963 }
 0x45c   : >> { %v966_v52 = vmax.f32 %v960_v49, %v964_v51  ;;  %v969_v2 = vmul.f32 1.442695, %v967_v50 }
 0x45e   : >> { %v968_v53 = vsub.f32 %v960_v49, %v966_v52  ;;  %1064 = vst.msk [vmem:[#allocation3 + $0x8] sm:$0xff] %vm627_vm0, %v966_v52  ;;  %980 = vperm.xlu1 %2410, %v966_v52  }
 0x460   : >> { %v971_v63 = vmul.f32 1.442695, %v968_v53 }
 0x4d5   : >> { %v976_v54 = vpop.permute.xlu1 %975 }
 0x4d6   : >> { %v983_v55 = vsub.f32 %v943_v40, %v976_v54 }
 0x4d8   : >> { %v985_v56 = vmul.f32 1.442695, %v983_v55 }
 0x4d9   : >> { %v981_v57 = vpop.permute.xlu1 %980 }
 0x4da   : >> { %2461 = vpow2.f32 %v985_v56  ;;  %v984_v58 = vsub.f32 %v946_v38, %v981_v57 }
 0x4dc   : >> { %v987_v59 = vmul.f32 1.442695, %v984_v58 }
 0x4de   : >> { %2463 = vpow2.f32 %v987_v59 }
 0x4df   : >> { %2465 = vpow2.f32 %v971_v63 }
 0x4e0   : >> { %2467 = vpow2.f32 %v969_v2 }
 0x4e7   : >> { %v2462_v60 = vpop.eup %2461 }
 0x4e8   : >> { %v989_v61 = vsel %vm3269_vm3, %v2462_v60, 0.0 }
 0x4e9   : >> { %995 = vadd.xlane.f32.xlu0 %v989_v61 }
 0x4eb   : >> { %v2464_v62 = vpop.eup %2463 }
 0x4ec   : >> { %v1976_v0 = vpack.c.bf16 %v2464_v62, %v2462_v60  ;;  %v990_v1 = vsel %vm3269_vm3, %v2464_v62, 0.0  ;;  %v2466_v3 = vpop.eup %2465 }
 0x4ed   : >> { %997 = vadd.xlane.f32.xlu1 %v990_v1  ;;  %v2468_v4 = vpop.eup %2467  ;;  %v994_v10 = vmul.f32 %v2466_v3, %v992_v8 }
 0x4ee   : >> { %2207 = vmatmul.mubr.msk.bf16.vlgmr.msra.gmra.mxu0 %vm1975_vm4, %v1976_v0  ;;  %v993_v6 = vmul.f32 %v2468_v4, %v991_v5 }
 0x4fe   : >> { %1012 = vperm.xlu1 %2410, %v2466_v3  }
 0x4ff   : >> { %1007 = vperm.xlu0 %2411, %v2468_v4  }
 0x503   : > { %2469 = vset.pattern.permute.xlu0 (%p636_p6), %v2845_v28 }
 0x572   : >> { %v996_v7 = vpop.xlane.xlu0 %995 }
 0x573   : >> { %v999_v9 = vadd.f32 %v996_v7, %v993_v6 }
 0x575   : >> { %1001 = vst.msk [vmem:[#allocation4] sm:$0xff] %vm627_vm0, %v999_v9 }
 0x576   : >> { %v998_v12 = vpop.xlane.xlu1 %997 }
 0x577   : >> { %v1000_v13 = vadd.f32 %v998_v12, %v994_v10 }
 0x579   : >> { %1002 = vst.msk [vmem:[#allocation4 + $0x8] sm:$0xff] %vm627_vm0, %v1000_v13 }
 0x57a   : >> { %v1008_v15 = vpop.permute.xlu0 %1007  ;;  %v1013_v18 = vpop.permute.xlu1 %1012 }
 0x57b   : >> { %v1015_v16 = vmul.f32 %v1008_v15, %v1003_v14  ;;  %v1016_v22 = vmul.f32 %v1013_v18, %v1004_v17 }
 0x57c   : > { %v1067_v26 = vld [vmem:[#allocation4] sm:$0xff] (%p636_p6) }
 0x57d   : > { %2470 = vrcp.f32 (%p636_p6), %v1067_v26 }
 0x580   : > { %v1068_v27 = vld [vmem:[#allocation4 + $0x8] sm:$0xff] (%p636_p6) }
 0x581   : > { %2472 = vrcp.f32 (%p636_p6), %v1068_v27 }
 0x58a   : > { %v2471_v29 = vpop.eup (%p636_p6), %2470 }
 0x58b   : > { %1073 = vperm.xlu0 (%p636_p6), %2469, %v2471_v29  }
 0x58e   : > { %v2473_v30 = vpop.eup (%p636_p6), %2472 }
 0x58f   : > { %1078 = vperm.xlu0 (%p636_p6), %2469, %v2473_v30  }
 0x5ae   : >> { %v1052_v19 = vpop.f32.mrf.mxu0 }
 0x5af   : >> { %v1059_v20 = vadd.f32 %v1052_v19, %v1015_v16 }
 0x5b0   : >> { %v2208_v21 = vpop.f32.mrf.mxu0 }
 0x5b1   : >> { %1061 = vst [vmem:[#allocation5] sm:$0xff] %v1059_v20  ;;  %638 = sbr.rel (!%p636_p6) target bundleno = 445 (0x1bd), region = 152 }
 0x5b2   : >> { %v1055_v23 = vpop.f32.mrf.mxu0 }
 0x5b3   : >> { %v1060_v24 = vadd.f32 %v1055_v23, %v1016_v22 }
 0x5b4   : >> { %v2209_v25 = vpop.f32.mrf.mxu0 }
 0x5b5   : >> { %1062 = vst [vmem:[#allocation5 + $0x8] sm:$0xff] %v1060_v24 }
 0x5b8   : > { %v1065_v32 = vld [vmem:[#allocation5] sm:$0xff] }
 0x5bc   : > { %v1066_v36 = vld [vmem:[#allocation5 + $0x8] sm:$0xff] }
 0x606   : > { %v1074_v34 = vpop.permute.xlu0 %1073 }
 0x607   : > { %v1081_v35 = vmul.f32 %v1074_v34, %v1065_v32 }
 0x609   : > { %v1087_v39 = vadd.f32 %v2068_v33, %v1081_v35 }
 0x60a   : > { %v1079_v40 = vpop.permute.xlu0 %1078 }
 0x60b   : > { %v1082_v41 = vmul.f32 %v1079_v40, %v1066_v36  ;;  %2474 = vtanh.f32 %v1087_v39 }
 0x60d   : > { %v1088_v11 = vadd.f32 %v2069_v37, %v1082_v41 }
 0x60f   : > { %2476 = vtanh.f32 %v1088_v11 }
 0x618   : > { %v2475_v42 = vpop.eup %2474 }
 0x61c   : > { %v2477_v38 = vpop.eup %2476 }
 0x61d   : > { %v2073_v43 = vpack.c.bf16 %v2477_v38, %v2475_v42 }
 0x61f   : > { %2074 = vst [vmem:[#allocation2] sm:$0xff] %v2073_v43  }
 0x620 PF: > { %v1159_v44 = vld [vmem:[%s3192_s26 + $0x1c0] sm:$0xff]  ;;  %v1160_v46 = vld [vmem:[%s3192_s26 + $0x1c8] sm:$0xff]  ;;  %v2846_v52 = vmov 0   ;;  %v1161_v43 = vld [vmem:[%s3192_s26 + $0x1d0] sm:$0xff]  ;;  %s3560_s20 = sld [smem:[#allocation31_spill]]  ;;  %s1740_s4 = sshll.u32 %s3208_s10, 4  ;;  %s3388_s4 = int_to_ptr.vmem [resolvable:$true] %s1740_s4 }
 0x621   : > { %v1163_v45 = vld [vmem:[%s3192_s26 + $0x1e0] sm:$0xff]  ;;  %v1164_v48 = vld [vmem:[%s3192_s26 + $0x1e8] sm:$0xff]  ;;  %1567 = vmatprep.mubr.bf16.mxu0 %v2846_v52  ;;  %1610 = vmatprep.mubr.bf16.mxu1 %v2846_v52  ;;  %s3561_s29 = sld [smem:[#allocation32_spill]]  ;;  %s3395_s25 = scalar_lea.sflag [#allocation10], %s481_s9 }
 0x622   : > { %v2038_v47 = vcombine.high %v1159_v44, %v1163_v45  ;;  %v2037_v49 = vcombine.low %v1159_v44, %v1163_v45  ;;  %v1151_v50 = vld [vmem:[%s3192_s26 + $0x180] sm:$0xff]  ;;  %v2040_v53 = vcombine.high %v1160_v46, %v1164_v48  ;;  %v2039_v54 = vcombine.low %v1160_v46, %v1164_v48  ;;  %v1152_v56 = vld [vmem:[%s3192_s26 + $0x188] sm:$0xff]  ;;  %v1165_v44 = vld [vmem:[%s3192_s26 + $0x1f0] sm:$0xff]  ;;  %s3563_s15 = sld [smem:[#allocation36_spill]]  ;;  %s2651_s27 = scalar_lea.vmem %s3388_s4, 2048 }
 0x623   : > { %v1155_v51 = vld [vmem:[%s3192_s26 + $0x1a0] sm:$0xff]  ;;  %v1156_v57 = vld [vmem:[%s3192_s26 + $0x1a8] sm:$0xff]  ;;  %v1162_v45 = vld [vmem:[%s3192_s26 + $0x1d8] sm:$0xff]  ;;  %s3564_s11 = sld [smem:[#allocation46_spill]]  ;;  %p2652_p9 = scmp.ne.s32.totalorder %s3388_s4, %s2651_s27 }
 0x624   : > { %v2030_v55 = vcombine.high %v1151_v50, %v1155_v51  ;;  %v1143_v58 = vld [vmem:[%s3192_s26 + $0x140] sm:$0xff]  ;;  %1535 = vmatprep.subr.bf16.mxu0 %v2038_v47  ;;  %v2032_v59 = vcombine.high %v1152_v56, %v1156_v57  ;;  %v1144_v61 = vld [vmem:[%s3192_s26 + $0x148] sm:$0xff]  ;;  %1578 = vmatprep.subr.bf16.mxu1 %v2040_v53  ;;  %v2029_v63 = vcombine.low %v1151_v50, %v1155_v51  ;;  %v1166_v46 = vld [vmem:[%s3192_s26 + $0x1f8] sm:$0xff]  ;;  %s2847_s28 = smov [#allocation18]  }
 0x625   : > { %v1147_v60 = vld [vmem:[%s3192_s26 + $0x160] sm:$0xff]  ;;  %v1148_v62 = vld [vmem:[%s3192_s26 + $0x168] sm:$0xff]  ;;  %1536 = vmatpush1.bf16.msra.mxu0 %v2037_v49  ;;  %1579 = vmatpush1.bf16.msra.mxu1 %v2039_v54  ;;  %v2031_v0 = vcombine.low %v1152_v56, %v1156_v57  ;;  %v2042_v49 = vcombine.high %v1161_v43, %v1165_v44  ;;  %v2044_v50 = vcombine.high %v1162_v45, %v1166_v46  ;;  %v1153_v51 = vld [vmem:[%s3192_s26 + $0x190] sm:$0xff]  ;;  %s2655_s12 = sshll.u32 %s2847_s28, 4  ;;  %s2656_s12 = int_to_ptr.vmem [resolvable:$false] %s2655_s12 }
 0x626   : > { %1537 = vmatprep.subr.bf16.mxu0 %v2030_v55  ;;  %v2022_v1 = vcombine.high %v1143_v58, %v1147_v60  ;;  %1580 = vmatprep.subr.bf16.mxu1 %v2032_v59  ;;  %v2024_v2 = vcombine.high %v1144_v61, %v1148_v62  ;;  %v1135_v3 = vld [vmem:[%s3192_s26 + $0x100] sm:$0xff]  ;;  %v1136_v5 = vld [vmem:[%s3192_s26 + $0x108] sm:$0xff]  ;;  %v2021_v7 = vcombine.low %v1143_v58, %v1147_v60  ;;  %v1157_v53 = vld [vmem:[%s3192_s26 + $0x1b0] sm:$0xff]  ;;  %s2657_s17 = scalar_lea.vmem %s2656_s12, 4096  ;;  %p2658_p7 = scmp.lt.s32.totalorder %s3388_s4, %s2656_s12 }
 0x627   : > { %v1139_v4 = vld [vmem:[%s3192_s26 + $0x120] sm:$0xff]  ;;  %v1140_v6 = vld [vmem:[%s3192_s26 + $0x128] sm:$0xff]  ;;  %v2023_v8 = vcombine.low %v1144_v61, %v1148_v62  ;;  %v3331_v54 = vld [vmem:[#allocation2] sm:$0xff]   ;;  %v2041_v57 = vcombine.low %v1161_v43, %v1165_v44  ;;  %v2043_v58 = vcombine.low %v1162_v45, %v1166_v46  ;;  %v2034_v59 = vcombine.high %v1153_v51, %v1157_v53  ;;  %s2060_s6 = sshll.u32 %s3561_s29, 5  ;;  %p2659_p2 = scmp.lt.s32.totalorder %s2657_s17, %s2651_s27 }
 0x628   : > { %v2014_v9 = vcombine.high %v1135_v3, %v1139_v4  ;;  %v2016_v10 = vcombine.high %v1136_v5, %v1140_v6  ;;  %v1127_v12 = vld [vmem:[%s3192_s26 + $0xc0] sm:$0xff]  ;;  %v1128_v14 = vld [vmem:[%s3192_s26 + $0xc8] sm:$0xff]  ;;  %v2013_v16 = vcombine.low %v1135_v3, %v1139_v4  ;;  %v2015_v17 = vcombine.low %v1136_v5, %v1140_v6  ;;  %v1154_v55 = vld [vmem:[%s3192_s26 + $0x198] sm:$0xff]  ;;  %p3565_p10 = scmp.ne.s32.totalorder %s3563_s15, 0 }
 0x629   : > { %1538 = vmatpush1.bf16.msra.mxu0 %v2029_v63  ;;  %1581 = vmatpush1.bf16.msra.mxu1 %v2031_v0  ;;  %v1131_v13 = vld [vmem:[%s3192_s26 + $0xe0] sm:$0xff]  ;;  %v1132_v15 = vld [vmem:[%s3192_s26 + $0xe8] sm:$0xff]  ;;  %v1158_v56 = vld [vmem:[%s3192_s26 + $0x1b8] sm:$0xff]  ;;  %v1169_v46 = vlaneseq  ;;  %p2660_p5 = por %p2659_p2, %p2658_p7 }
 0x62a   : > { %1539 = vmatprep.subr.bf16.mxu0 %v2022_v1  ;;  %1582 = vmatprep.subr.bf16.mxu1 %v2024_v2  ;;  %v2006_v18 = vcombine.high %v1127_v12, %v1131_v13  ;;  %v2008_v19 = vcombine.high %v1128_v14, %v1132_v15  ;;  %v1119_v20 = vld [vmem:[%s3192_s26 + $0x80] sm:$0xff]  ;;  %v1120_v22 = vld [vmem:[%s3192_s26 + $0x88] sm:$0xff]  ;;  %v2005_v24 = vcombine.low %v1127_v12, %v1131_v13  ;;  %v1145_v61 = vld [vmem:[%s3192_s26 + $0x150] sm:$0xff]  ;;  %p2653_p4 = pnand %p2652_p9, %p3565_p10 }
 0x62b   : > { %v1123_v21 = vld [vmem:[%s3192_s26 + $0xa0] sm:$0xff]  ;;  %v1124_v23 = vld [vmem:[%s3192_s26 + $0xa8] sm:$0xff]  ;;  %v2007_v25 = vcombine.low %v1128_v14, %v1132_v15  ;;  %v2036_v60 = vcombine.high %v1154_v55, %v1158_v56  ;;  %v1149_v62 = vld [vmem:[%s3192_s26 + $0x170] sm:$0xff]  ;;  %v2033_v1 = vcombine.low %v1153_v51, %v1157_v53  ;;  %v2035_v2 = vcombine.low %v1154_v55, %v1158_v56 }
 0x62c   : > { %v1998_v26 = vcombine.high %v1119_v20, %v1123_v21  ;;  %v2000_v27 = vcombine.high %v1120_v22, %v1124_v23  ;;  %v1111_v28 = vld [vmem:[%s3192_s26 + $0x40] sm:$0xff]  ;;  %v1112_v30 = vld [vmem:[%s3192_s26 + $0x48] sm:$0xff]  ;;  %v1997_v32 = vcombine.low %v1119_v20, %v1123_v21  ;;  %v1999_v33 = vcombine.low %v1120_v22, %v1124_v23  ;;  %v1146_v63 = vld [vmem:[%s3192_s26 + $0x158] sm:$0xff]  ;;  %p2654_p1 = pneg %p2653_p4 }
 0x62d   : > { %1540 = vmatpush1.bf16.msra.mxu0 %v2021_v7  ;;  %1583 = vmatpush1.bf16.msra.mxu1 %v2023_v8  ;;  %v1115_v29 = vld [vmem:[%s3192_s26 + $0x60] sm:$0xff]  ;;  %v1116_v31 = vld [vmem:[%s3192_s26 + $0x68] sm:$0xff]  ;;  %v1150_v0 = vld [vmem:[%s3192_s26 + $0x178] sm:$0xff]  ;;  %v2026_v3 = vcombine.high %v1145_v61, %v1149_v62 }
 0x62e   : > { %1541 = vmatprep.subr.bf16.mxu0 %v2014_v9  ;;  %1584 = vmatprep.subr.bf16.mxu1 %v2016_v10  ;;  %v1990_v34 = vcombine.high %v1111_v28, %v1115_v29  ;;  %v1992_v35 = vcombine.high %v1112_v30, %v1116_v31  ;;  %v1103_v36 = vld [vmem:[%s3192_s26] sm:$0xff]  ;;  %v1104_v39 = vld [vmem:[%s3192_s26 + $0x8] sm:$0xff]  ;;  %v1989_v41 = vcombine.low %v1111_v28, %v1115_v29  ;;  %v1137_v5 = vld [vmem:[%s3192_s26 + $0x110] sm:$0xff]  ;;  %p2661_p13 = pnand %p2660_p5, %p2654_p1 }
 0x62f   : > { %v1107_v37 = vld [vmem:[%s3192_s26 + $0x20] sm:$0xff]  ;;  %v1108_v40 = vld [vmem:[%s3192_s26 + $0x28] sm:$0xff]  ;;  %v1991_v11 = vcombine.low %v1112_v30, %v1116_v31  ;;  %v2028_v4 = vcombine.high %v1146_v63, %v1150_v0  ;;  %v1141_v6 = vld [vmem:[%s3192_s26 + $0x130] sm:$0xff]  ;;  %v2025_v9 = vcombine.low %v1145_v61, %v1149_v62  ;;  %v2027_v10 = vcombine.low %v1146_v63, %v1150_v0 }
 0x630   : > { %v1982_v42 = vcombine.high %v1103_v36, %v1107_v37  ;;  %v1984_v38 = vcombine.high %v1104_v39, %v1108_v40  ;;  %v1981_v47 = vcombine.low %v1103_v36, %v1107_v37  ;;  %v1983_v48 = vcombine.low %v1104_v39, %v1108_v40  ;;  %v1138_v7 = vld [vmem:[%s3192_s26 + $0x118] sm:$0xff]  ;;  %v1129_v14 = vld [vmem:[%s3192_s26 + $0xd0] sm:$0xff] }
 0x631   : > { %1542 = vmatpush1.bf16.msra.mxu0 %v2013_v16  ;;  %1585 = vmatpush1.bf16.msra.mxu1 %v2015_v17  ;;  %v1142_v8 = vld [vmem:[%s3192_s26 + $0x138] sm:$0xff]  ;;  %v2018_v12 = vcombine.high %v1137_v5, %v1141_v6  ;;  %v1133_v15 = vld [vmem:[%s3192_s26 + $0xf0] sm:$0xff] }
 0x632   : > { %1543 = vmatprep.subr.bf16.mxu0 %v2006_v18  ;;  %1586 = vmatprep.subr.bf16.mxu1 %v2008_v19  ;;  %v2020_v13 = vcombine.high %v1138_v7, %v1142_v8  ;;  %v1130_v16 = vld [vmem:[%s3192_s26 + $0xd8] sm:$0xff]  ;;  %v2017_v18 = vcombine.low %v1137_v5, %v1141_v6  ;;  %v2010_v19 = vcombine.high %v1129_v14, %v1133_v15  ;;  %v1121_v21 = vld [vmem:[%s3192_s26 + $0x90] sm:$0xff] }
 0x633   : > { %v1134_v17 = vld [vmem:[%s3192_s26 + $0xf8] sm:$0xff]  ;;  %v1125_v22 = vld [vmem:[%s3192_s26 + $0xb0] sm:$0xff] }
 0x634   : > { %v2012_v20 = vcombine.high %v1130_v16, %v1134_v17  ;;  %v1122_v23 = vld [vmem:[%s3192_s26 + $0x98] sm:$0xff]  ;;  %v1113_v29 = vld [vmem:[%s3192_s26 + $0x50] sm:$0xff] }
 0x635   : > { %1544 = vmatpush1.bf16.msra.mxu0 %v2005_v24  ;;  %1587 = vmatpush1.bf16.msra.mxu1 %v2007_v25  ;;  %v1126_v24 = vld [vmem:[%s3192_s26 + $0xb8] sm:$0xff]  ;;  %v2009_v25 = vcombine.low %v1129_v14, %v1133_v15  ;;  %v1117_v30 = vld [vmem:[%s3192_s26 + $0x70] sm:$0xff] }
 0x636   : > { %1545 = vmatprep.subr.bf16.mxu0 %v1998_v26  ;;  %1588 = vmatprep.subr.bf16.mxu1 %v2000_v27  ;;  %v2011_v26 = vcombine.low %v1130_v16, %v1134_v17  ;;  %v2002_v27 = vcombine.high %v1121_v21, %v1125_v22  ;;  %v2004_v28 = vcombine.high %v1122_v23, %v1126_v24  ;;  %v1114_v31 = vld [vmem:[%s3192_s26 + $0x58] sm:$0xff]  ;;  %v1105_v37 = vld [vmem:[%s3192_s26 + $0x10] sm:$0xff] }
 0x637   : > { %v1109_v39 = vld [vmem:[%s3192_s26 + $0x30] sm:$0xff]  ;;  %v1106_v40 = vld [vmem:[%s3192_s26 + $0x18] sm:$0xff] }
 0x638   : > { %v1985_v44 = vcombine.low %v1105_v37, %v1109_v39 }
 0x639   : > { %1546 = vmatpush1.bf16.msra.mxu0 %v1997_v32  ;;  %1589 = vmatpush1.bf16.msra.mxu1 %v1999_v33  ;;  %v1118_v32 = vld [vmem:[%s3192_s26 + $0x78] sm:$0xff]  ;;  %v2001_v33 = vcombine.low %v1121_v21, %v1125_v22 }
 0x63a   : > { %1547 = vmatprep.subr.bf16.mxu0 %v1990_v34  ;;  %1590 = vmatprep.subr.bf16.mxu1 %v1992_v35  ;;  %v2003_v34 = vcombine.low %v1122_v23, %v1126_v24  ;;  %v1994_v35 = vcombine.high %v1113_v29, %v1117_v30  ;;  %v1996_v36 = vcombine.high %v1114_v31, %v1118_v32 }
 0x63d   : > { %1548 = vmatpush1.bf16.msra.mxu0 %v1989_v41  ;;  %1591 = vmatpush1.bf16.msra.mxu1 %v1991_v11  ;;  %v1110_v41 = vld [vmem:[%s3192_s26 + $0x38] sm:$0xff]  ;;  %v1993_v11 = vcombine.low %v1113_v29, %v1117_v30  ;;  %s2047_s26 = sshll.u32 %s3560_s20, 3 }
 0x63e   : > { %1549 = vmatprep.subr.bf16.mxu0 %v1982_v42  ;;  %1592 = vmatprep.subr.bf16.mxu1 %v1984_v38  ;;  %v1995_v42 = vcombine.low %v1114_v31, %v1118_v32  ;;  %v1986_v38 = vcombine.high %v1105_v37, %v1109_v39  ;;  %v1988_v43 = vcombine.high %v1106_v40, %v1110_v41 }
 0x63f   : > { %v1987_v45 = vcombine.low %v1106_v40, %v1110_v41 }
 0x641   : > { %1550 = vmatpush1.bf16.msra.mxu0 %v1981_v47  ;;  %1593 = vmatpush1.bf16.msra.mxu1 %v1983_v48  ;;  %v1170_v47 = vshrl.u32 %v1169_v46, 7 }
 0x642   : > { %1621 = vmatprep.subr.bf16.mxu0 %v2042_v49  ;;  %1664 = vmatprep.subr.bf16.mxu1 %v2044_v50  ;;  %v1167_v49 = vld [vmem:[%s436_s21] sm:$0xff]  ;;  %s1737_s21 = sadd.s32 %s2060_s6, %s2047_s26 }
 0x643   : > { %v1171_v48 = vsub.s32 0, %v1170_v47  ;;  %v1179_v50 = vsub.s32 2, %v1170_v47  ;;  %v1175_v51 = vsub.s32 1, %v1170_v47  ;;  %v1183_v53 = vsub.s32 3, %v1170_v47  ;;  %s2049_s30 = sshll.u32 %s1737_s21, 7 }
 0x644   : > { %1568 = vmatmul.mubr.bf16.vlgmr.msra.gmra.mxu0 %v3331_v54  ;;  %1611 = vmatmul.mubr.bf16.vlgmr.msra.gmra.mxu1 %v3331_v54  ;;  %v1199_v14 = vsub.s32 7, %v1170_v47  ;;  %s3385_s18 = scalar_lea.hbm %s3564_s11, %s2049_s30 }
 0x645   : > { %1622 = vmatpush1.bf16.msra.mxu0 %v2041_v57  ;;  %1665 = vmatpush1.bf16.msra.mxu1 %v2043_v58  ;;  %v1172_v55 = vrot.slane %v1167_v49, %v1171_v48  ;;  %v1180_v56 = vrot.slane %v1167_v49, %v1179_v50  ;;  %v1176_v57 = vrot.slane %v1167_v49, %v1175_v51 }
 0x646   : > { %1623 = vmatprep.subr.bf16.mxu0 %v2034_v59  ;;  %1666 = vmatprep.subr.bf16.mxu1 %v2036_v60  ;;  %v1184_v59 = vrot.slane %v1167_v49, %v1183_v53 }
 0x647   : > { %1653 = vmatprep.mubr.bf16.mxu0 %v2846_v52  ;;  %1696 = vmatprep.mubr.bf16.mxu1 %v2846_v52  ;;  %v2019_v52 = vcombine.low %v1138_v7, %v1142_v8 }
 0x649   : > { %1624 = vmatpush1.bf16.msra.mxu0 %v2033_v1  ;;  %1667 = vmatpush1.bf16.msra.mxu1 %v2035_v2 }
 0x64a   : > { %1625 = vmatprep.subr.bf16.mxu0 %v2026_v3  ;;  %1668 = vmatprep.subr.bf16.mxu1 %v2028_v4 }
 0x64d   : > { %1626 = vmatpush1.bf16.msra.mxu0 %v2025_v9  ;;  %1669 = vmatpush1.bf16.msra.mxu1 %v2027_v10  ;;  %v1187_v10 = vsub.s32 4, %v1170_v47 }
 0x64e   : > { %1627 = vmatprep.subr.bf16.mxu0 %v2018_v12  ;;  %1670 = vmatprep.subr.bf16.mxu1 %v2020_v13  ;;  %v1195_v12 = vsub.s32 6, %v1170_v47  ;;  %v1191_v13 = vsub.s32 5, %v1170_v47 }
 0x64f   : > { %v1188_v15 = vrot.slane %v1167_v49, %v1187_v10 }
 0x650   : > { %v1196_v16 = vrot.slane %v1167_v49, %v1195_v12  ;;  %v1192_v17 = vrot.slane %v1167_v49, %v1191_v13 }
 0x651   : > { %1628 = vmatpush1.bf16.msra.mxu0 %v2017_v18  ;;  %1671 = vmatpush1.bf16.msra.mxu1 %v2019_v52  ;;  %v1200_v52 = vrot.slane %v1167_v49, %v1199_v14 }
 0x652   : > { %1629 = vmatprep.subr.bf16.mxu0 %v2010_v19  ;;  %1672 = vmatprep.subr.bf16.mxu1 %v2012_v20 }
 0x655   : > { %1630 = vmatpush1.bf16.msra.mxu0 %v2009_v25  ;;  %1673 = vmatpush1.bf16.msra.mxu1 %v2011_v26 }
 0x656   : > { %1631 = vmatprep.subr.bf16.mxu0 %v2002_v27  ;;  %1674 = vmatprep.subr.bf16.mxu1 %v2004_v28 }
 0x659   : > { %1632 = vmatpush1.bf16.msra.mxu0 %v2001_v33  ;;  %1675 = vmatpush1.bf16.msra.mxu1 %v2003_v34 }
 0x65a   : > { %1633 = vmatprep.subr.bf16.mxu0 %v1994_v35  ;;  %1676 = vmatprep.subr.bf16.mxu1 %v1996_v36 }
 0x65d   : > { %1634 = vmatpush1.bf16.msra.mxu0 %v1993_v11  ;;  %1677 = vmatpush1.bf16.msra.mxu1 %v1995_v42 }
 0x65e   : > { %1635 = vmatprep.subr.bf16.mxu0 %v1986_v38  ;;  %1678 = vmatprep.subr.bf16.mxu1 %v1988_v43 }
 0x661   : > { %1636 = vmatpush1.bf16.msra.mxu0 %v1985_v44  ;;  %1679 = vmatpush1.bf16.msra.mxu1 %v1987_v45 }
 0x664   : > { %1654 = vmatmul.mubr.bf16.vlgmr.msra.gmra.mxu0 %v3331_v54  ;;  %1697 = vmatmul.mubr.bf16.vlgmr.msra.gmra.mxu1 %v3331_v54 }
 0x704   : > { %v1569_v58 = vpop.f32.mrf.mxu0  ;;  %v1612_v54 = vpop.f32.mrf.mxu1 }
 0x705   : > { %v1570_v60 = vadd.f32 %v1569_v58, %v1172_v55  ;;  %v1613_v61 = vadd.f32 %v1612_v54, %v1180_v56 }
 0x706   : > { %v1571_v62 = vpop.f32.mrf.mxu0  ;;  %v1614_v0 = vpop.f32.mrf.mxu1 }
 0x707   : > { %1707 = vst [vmem:[%s3208_s10] sm:$0xff] %v1570_v60  ;;  %v1572_v63 = vadd.f32 %v1571_v62, %v1176_v57  ;;  %1709 = vst [vmem:[%s3208_s10 + $0x10] sm:$0xff] %v1613_v61  ;;  %v1615_v1 = vadd.f32 %v1614_v0, %v1184_v59 }
 0x708   : > { %v1573_v2 = vpop.f32.mrf.mxu0  ;;  %v1616_v4 = vpop.f32.mrf.mxu1 }
 0x709   : > { %1708 = vst [vmem:[%s3208_s10 + $0x8] sm:$0xff] %v1572_v63  ;;  %v1574_v3 = vadd.f32 %v1573_v2, %v1172_v55  ;;  %1710 = vst [vmem:[%s3208_s10 + $0x18] sm:$0xff] %v1615_v1  ;;  %v1617_v5 = vadd.f32 %v1616_v4, %v1180_v56 }
 0x70a   : > { %v1575_v6 = vpop.f32.mrf.mxu0  ;;  %v1618_v8 = vpop.f32.mrf.mxu1 }
 0x70b   : > { %1715 = vst [vmem:[%s3208_s10 + $0x40] sm:$0xff] %v1574_v3  ;;  %v1576_v7 = vadd.f32 %v1575_v6, %v1176_v57  ;;  %1717 = vst [vmem:[%s3208_s10 + $0x50] sm:$0xff] %v1617_v5  ;;  %v1619_v9 = vadd.f32 %v1618_v8, %v1184_v59 }
 0x70d   : > { %1716 = vst [vmem:[%s3208_s10 + $0x48] sm:$0xff] %v1576_v7  ;;  %1718 = vst [vmem:[%s3208_s10 + $0x58] sm:$0xff] %v1619_v9 }
 0x724   : > { %v1655_v18 = vpop.f32.mrf.mxu0  ;;  %v1698_v20 = vpop.f32.mrf.mxu1 }
 0x725   : > { %v1656_v19 = vadd.f32 %v1655_v18, %v1188_v15  ;;  %v1699_v21 = vadd.f32 %v1698_v20, %v1196_v16 }
 0x726   : > { %v1657_v22 = vpop.f32.mrf.mxu0  ;;  %v1700_v24 = vpop.f32.mrf.mxu1 }
 0x727   : > { %1711 = vst [vmem:[%s3208_s10 + $0x20] sm:$0xff] %v1656_v19  ;;  %v1658_v23 = vadd.f32 %v1657_v22, %v1192_v17  ;;  %1713 = vst [vmem:[%s3208_s10 + $0x30] sm:$0xff] %v1699_v21  ;;  %v1701_v25 = vadd.f32 %v1700_v24, %v1200_v52 }
 0x728   : > { %v1659_v26 = vpop.f32.mrf.mxu0  ;;  %v1702_v28 = vpop.f32.mrf.mxu1 }
 0x729   : > { %1712 = vst [vmem:[%s3208_s10 + $0x28] sm:$0xff] %v1658_v23  ;;  %v1660_v27 = vadd.f32 %v1659_v26, %v1188_v15  ;;  %1714 = vst [vmem:[%s3208_s10 + $0x38] sm:$0xff] %v1701_v25  ;;  %v1703_v29 = vadd.f32 %v1702_v28, %v1196_v16 }
 0x72a   : > { %v1661_v30 = vpop.f32.mrf.mxu0  ;;  %v1704_v32 = vpop.f32.mrf.mxu1 }
 0x72b   : > { %1719 = vst [vmem:[%s3208_s10 + $0x60] sm:$0xff] %v1660_v27  ;;  %v1662_v31 = vadd.f32 %v1661_v30, %v1192_v17  ;;  %1721 = vst [vmem:[%s3208_s10 + $0x70] sm:$0xff] %v1703_v29  ;;  %v1705_v33 = vadd.f32 %v1704_v32, %v1200_v52 }
 0x72d   : > { %1720 = vst [vmem:[%s3208_s10 + $0x68] sm:$0xff] %v1662_v31  ;;  %1722 = vst [vmem:[%s3208_s10 + $0x78] sm:$0xff] %v1705_v33 }
 0x72e   : > { %2664 = shalt.err (!%p2661_p13)
}
 0x72f   : > { %s2665_s9 = scalar_lea.hbm %s3385_s18, 2048  ;;  %s2669_s29 = scalar_lea.hbm %s3564_s11, 8192 }
 0x730   : > { %p2666_p0 = scmp.ne.s32.totalorder %s3385_s18, %s2665_s9  ;;  %p2670_p11 = scmp.lt.s32.totalorder %s3385_s18, %s3564_s11 }
 0x731   : > { %p2671_p3 = scmp.lt.s32.totalorder %s2669_s29, %s2665_s9 }
 0x732   : > { %p2667_p8 = pnand %p2666_p0, %p3565_p10 }
 0x733   : > { %p2672_p6 = por %p2671_p3, %p2670_p11 }
 0x734   : > { %p2668_p12 = pneg %p2667_p8 }
 0x736   : > { %p2673_p9 = pnand %p2672_p6, %p2668_p12 }
 0x738   : > { %2676 = shalt.err (!%p2673_p9)
}
 0x739   : > { %s2848_s21 = smov 1024   ;;  %s2849_s30 = smov 2048  }
 0x73a   : > { %s2850_s3 = smov 64  }
 0x73b   : > { %2226 = dma.vmem_to_hbm [thread:$0]  (%p3565_p10), %s3388_s4, 2048, %s3385_s18, %s3395_s25, %s2848_s21, %s2849_s30, %s2850_s3  }
 0x73c PF: > { %s3566_s16 = sld [smem:[#allocation27_spill]]  ;;  %p2257_p4 = scmp.ge.s32.totalorder %s2821_s24, 2 }
 0x73d   : > { %s3567_s1 = sld [smem:[#allocation37_spill]] }
 0x742   : > { %s1755_s27 = sand.u32 1, %s3566_s16  }
 0x743   : > { %p3568_p1 = scmp.ne.s32.totalorder %s3567_s1, 0  ;;  %s1756_s28 = scalar_lea.sflag [#allocation10], %s1755_s27 }
 0x745   : > { %p2249_p7 = pnand %p2257_p4, %p3568_p1 }
 0x747   : > { %p2250_p2 = pneg %p2249_p7 }
 0x749   : > { %2764 = dma.done.wait (%p2250_p2), %s1756_s28, 2048  }
 0x74a   : > { %2766 = vsyncadd (%p2250_p2), %s1756_s28, 4294965248  ;;  %s33_s24 = sadd.s32 1, %s2821_s24   ;;  %s3570_s15 = sld [smem:[#allocation28_spill]] }
 0x74b   : > { %p3423_p5 = scmp.ge.s32.totalorder %s33_s24, 6   ;;  %s3571_s4 = smov %s3072_s13 }
 0x74c   : > { %s3572_s18 = sld [smem:[#allocation29_spill]]  ;;  %s3580_s13 = smov %s2777_s14 }
 0x74d   : > { %s3573_s25 = sld [smem:[#allocation40_spill]]  ;;  %s3581_s14 = smov %s3571_s4 }
 0x74e   : > { %s3574_s17 = sld [smem:[#allocation30_spill]]  ;;  %s3583_s16 = smov %s2789_s0 }
 0x74f   : > { %s3575_s9 = sld [smem:[#allocation41_spill]]  ;;  %s3587_s20 = smov %s2813_s22 }
 0x750   : > { %s3576_s10 = sld [smem:[#allocation38_spill]]  ;;  %s3579_s12 = smov %s3570_s15 }
 0x751   : > { %s3577_s29 = sld [smem:[#allocation39_spill]]  ;;  %s3588_s21 = smov %s2817_s23 }
 0x752   : > { %s3582_s15 = smov %s3572_s18  ;;  %s3585_s18 = smov %s2801_s19 }
 0x753   : > { %s3584_s0 = smov %s3573_s25  ;;  %32 = sbr.rel (!%p3423_p5) target bundleno = 23 (0x17), region = 163 }
 0x755   : > { %s3586_s19 = smov %s3575_s9 }
 0x756   : > { %s3589_s22 = smov %s3576_s10 }
 0x757   : > { %s3590_s23 = smov %s3577_s29 }
 0x758   :  { %1761 = vsyncpa [#allocation9], 1 }
 0x759   :  { %1763 = vsyncpa [#allocation9 + $0x1], 1 }
 0x75a   :  { %1764 = vsyncpa [#allocation12], 1 }
 0x75b   :  { %1766 = vsyncpa [#allocation12 + $0x1], 1 }
 0x75c   :  { %1767 = vsyncpa [#allocation15], 1 }
 0x75d   :  { %1768 = vsyncpa [#allocation10], 1 }
 0x75e   :  { %1770 = vsyncpa [#allocation10 + $0x1], 1 }

</bundles_post_ra>
